<compile_context>
chip_gen: v6e
topology: v6e:2x2x1
jax: 0.10.0
libtpu: 0.0.40
codegen_flags: <defaults>
</compile_context>

<pallas_src>
import functools

import jax
import jax.numpy as jnp
from jax import lax
from jax.experimental import pallas as pl
from jax.experimental.pallas import tpu as pltpu


def _fast_recip(x):
    # EUP approximate reciprocal + one Newton step: divide leaves the VPU, ~f32 accurate.
    r = pl.reciprocal(x, approx=True)
    return r * (2.0 - x * r)


def _softmax_lastdim(s, bias):
    # Row softmax over the last axis; `bias` (0 / -1e30 additive mask) may be None.
    if bias is not None:
        s = s + bias
    s_max = jnp.max(s, axis=-1, keepdims=True)
    e = jnp.exp(s - s_max)
    return e * _fast_recip(jnp.sum(e, axis=-1, keepdims=True))


def _nystrom_kernel(*refs, L, D, m, HB, grp, num_iters, scaled, ns_dtype):
    if HB > 1:
        g_ref, b1_ref, b2_ref, b3_ref, q_ref, k_ref, v_ref, o_ref = refs
    else:
        g_ref, q_ref, k_ref, v_ref, o_ref = refs
        b1_ref = b2_ref = b3_ref = None

    HBm = HB * m

    q = q_ref[0]              # (HB*L, D), HB (batch,head) pairs stacked head-major
    k = k_ref[0]
    v = v_ref[0]
    dt = q.dtype              # matmul-input dtype (bf16 stays bf16)

    if scaled:
        # Fold the whole D^-0.5 into q (landmark pooling is linear, so this is
        # algebraically identical to scaling q and k by D^-0.25 each); saves one
        # full VPU pass over the (HBL, D) k tile per grid step.
        q = q * (float(D) ** -0.5)

    # ---- landmark pooling: G holds exact 0/1; mean = f32-accumulated sum * 1/grp ----
    G = g_ref[...]                                                 # (HBm, HBL)
    inv_grp = 1.0 / float(grp)
    q_lm = (jnp.dot(G, q, preferred_element_type=jnp.float32) * inv_grp).astype(dt)
    k_lm = (jnp.dot(G, k, preferred_element_type=jnp.float32) * inv_grp).astype(dt)

    # Contract dim 1 of both operands == A @ B.T without materializing B.T.
    nt = (((1,), (1,)), ((), ()))

    b1 = b1_ref[...] if b1_ref is not None else None               # (HBL, HBm) f32
    b2 = b2_ref[...] if b2_ref is not None else None               # (HBm, HBm) f32
    b3 = b3_ref[...] if b3_ref is not None else None               # (HBm, HBL) f32

    # kernel_1: tokens x own-head landmarks.
    s1 = lax.dot_general(q, k_lm, nt, preferred_element_type=jnp.float32)
    k1 = _softmax_lastdim(s1, b1)                                  # (HBL, HBm) f32

    # kernel_2: landmarks x landmarks -> exactly block-diagonal after masking
    # (masked scores sit at ~-1e30 in f32, so exp() underflows to exact zeros).
    s2 = lax.dot_general(q_lm, k_lm, nt, preferred_element_type=jnp.float32)
    k2 = _softmax_lastdim(s2, b2)                                  # (HBm, HBm) f32

    # kernel_3: landmarks x own-head tokens.
    s3 = lax.dot_general(q_lm, k, nt, preferred_element_type=jnp.float32)
    k3 = _softmax_lastdim(s3, b3)                                  # (HBm, HBL) f32

    # right = kernel_3 @ v (native-dtype MXU inputs, f32 accumulation).
    right = jnp.dot(k3.astype(dt), v, preferred_element_type=jnp.float32)  # (HBm, D)

    # ---- Newton-Schulz pseudo-inverse of the block-diagonal kernel_2 ----
    # 'inv_init_coeff_option': per-head init scale = max over that head's columns of
    # its column sums (segment-max via the b2==0 same-head mask).  The block-diagonal
    # structure is exact, so all HB heads advance through the same num_iters chain in
    # parallel on one (HBm, HBm) operand.
    col_sum = jnp.sum(k2, axis=0, keepdims=True)                   # (1, HBm)
    if HB > 1:
        same = b2 == 0.0                                           # (HBm, HBm)
        head_max = jnp.max(jnp.where(same, col_sum, -1e30), axis=1, keepdims=True)
    else:
        head_max = jnp.max(col_sum, axis=1, keepdims=True)         # (1, 1)

    I = jnp.eye(HBm, dtype=jnp.float32)
    V = k2.T * _fast_recip(head_max)                               # (HBm, HBm) f32
    k2_ns = k2.astype(ns_dtype)
    for _ in range(num_iters):
        KV = jnp.dot(k2_ns, V.astype(ns_dtype), preferred_element_type=jnp.float32)
        KV_ns = KV.astype(ns_dtype)
        t1 = 7.0 * I - KV
        t2 = 15.0 * I - jnp.dot(KV_ns, t1.astype(ns_dtype),
                                preferred_element_type=jnp.float32)
        t3 = 13.0 * I - jnp.dot(KV_ns, t2.astype(ns_dtype),
                                preferred_element_type=jnp.float32)
        V = jnp.dot((0.25 * V).astype(ns_dtype), t3.astype(ns_dtype),
                    preferred_element_type=jnp.float32)

    # out = kernel_1 @ (pinv(kernel_2) @ (kernel_3 @ v))
    # Reassociated so the (HBm x HBm) weight only streams HBm rows; cross-head terms
    # vanish because k1 / V / right are exactly zero outside their own head blocks.
    vr = jnp.dot(V.astype(dt), right.astype(dt), preferred_element_type=jnp.float32)
    out = jnp.dot(k1.astype(dt), vr.astype(dt), preferred_element_type=jnp.float32)
    o_ref[0] = out.astype(o_ref.dtype)


def _tpu_generation():
    try:
        kind = jax.devices()[0].device_kind.lower()
    except Exception:
        return None
    for g in (7, 6, 5):
        if f"v{g}" in kind:
            return g
    return None


def _gen_defaults(gen):
    """(max stacked lanes, vmem_limit cap, block-picker VMEM budget)."""
    if gen == 5:
        return 128, 100 * 2**20, 72 * 2**20   # 4x128^2 MXU, 128 MiB VMEM
    if gen == 6:
        return 256, 100 * 2**20, 72 * 2**20   # 2x256^2 MXU, 128 MiB VMEM
    if gen == 7:
        return 256, 48 * 2**20, 32 * 2**20    # 2x256^2 MXU, only 64 MiB VMEM
    return 128, 64 * 2**20, 32 * 2**20        # unknown backend: conservative


def _vmem_estimate(hb, m, L, D, itemsize):
    hbl, hbm = hb * L, hb * m
    bias = 0 if hb == 1 else 8 * (2 * hbl * hbm + hbm * hbm)      # f32 biases, 2-buffered
    return (8 * hbl * D * itemsize                                # q/k/v/out, 2-buffered
            + 2 * hbm * hbl * itemsize                            # pooling matrix G
            + bias
            + 4 * (3 * hbl * hbm + 2 * hbl * D + 8 * hbm * hbm))  # live f32 temporaries


def _pick_block(B, m, L, D, itemsize, *, max_lanes, vmem_budget):
    """Largest divisor HB of B (= batch*heads) such that the stacked landmark width
    HB*m fills but does not exceed the MXU lane target and the per-step working set
    fits the VMEM budget; prefers leaving >= 2 grid steps so the flattened parallel
    axis can split across both TensorCores on v7x."""
    cands = [hb for hb in range(1, B + 1)
             if B % hb == 0
             and hb * m <= max(max_lanes, m)
             and _vmem_estimate(hb, m, L, D, itemsize) <= vmem_budget]
    if not cands:
        return 1
    multi = [hb for hb in cands if B // hb >= 2]
    return max(multi) if multi else max(cands)


def nystrom_attention_pallas(q, k, v, *, num_landmarks, num_iters=6, scaled=True,
                             ns_matmul_dtype=None):
    """q, k, v: [N, L, H, D] (dim_last=True). Returns [N, L, H, D].

    Implements the Nystrom branch of the module (num_landmarks < L, landmarks from
    segment means, method='inv_init_coeff_option').
    """
    N, L, H, D = q.shape
    m = int(num_landmarks)
    assert 0 < m < L and L % m == 0, "num_landmarks must divide seq_len"
    grp = L // m

    gen = _tpu_generation()
    max_lanes, vmem_cap, pick_budget = _gen_defaults(gen)

    itemsize = jnp.dtype(q.dtype).itemsize
    B = N * H                              # fold batch into the stacking dimension
    HB = _pick_block(B, m, L, D, itemsize, max_lanes=max_lanes, vmem_budget=pick_budget)
    NG = B // HB
    HBL, HBm = HB * L, HB * m

    # Newton-Schulz MXU input dtype: follow the data dtype (bf16 in -> bf16 passes with
    # f32 accumulation; f32 in stays f32 so full-precision checks stay tight).
    if ns_matmul_dtype is None:
        ns_matmul_dtype = jnp.bfloat16 if q.dtype == jnp.dtype(jnp.bfloat16) else jnp.float32

    # [N, L, H, D] -> [N, H, L, D] -> (NG, HB*L, D): each grid step gets HB (batch,head)
    # pairs stacked head-major as one 2-D tile (no in-kernel reshapes/relayouts).
    qs = jnp.transpose(q, (0, 2, 1, 3)).reshape(NG, HBL, D)
    ks = jnp.transpose(k, (0, 2, 1, 3)).reshape(NG, HBL, D)
    vs = jnp.transpose(v, (0, 2, 1, 3)).reshape(NG, HBL, D)

    # Hoisted landmark-pooling matrix (exact 0/1 entries; 1/grp applied in-kernel after
    # f32 accumulation).  Stacked token r = h*L + l maps to stacked landmark r // grp.
    r_idx = jnp.arange(HBL)[None, :] // grp
    s_idx = jnp.arange(HBm)[:, None]
    G = (r_idx == s_idx).astype(q.dtype)                           # (HBm, HBL)

    const2d = lambda shape: pl.BlockSpec(shape, lambda i: (0, 0))
    blk = pl.BlockSpec((1, HBL, D), lambda i: (i, 0, 0))

    if HB > 1:
        # Precomputed additive softmax biases (0 inside own head block, -1e30 outside),
        # fetched once via constant index maps -> no per-step mask construction.
        tok_head = jnp.arange(HBL) // L
        lm_head = jnp.arange(HBm) // m
        b1 = jnp.where(tok_head[:, None] == lm_head[None, :], 0.0, -1e30).astype(jnp.float32)
        b2 = jnp.where(lm_head[:, None] == lm_head[None, :], 0.0, -1e30).astype(jnp.float32)
        b3 = jnp.where(lm_head[:, None] == tok_head[None, :], 0.0, -1e30).astype(jnp.float32)
        consts = (G, b1, b2, b3)
        const_specs = [const2d((HBm, HBL)), const2d((HBL, HBm)),
                       const2d((HBm, HBm)), const2d((HBm, HBL))]
    else:
        consts = (G,)
        const_specs = [const2d((HBm, HBL))]

    kernel = functools.partial(
        _nystrom_kernel, L=L, D=D, m=m, HB=HB, grp=grp,
        num_iters=num_iters, scaled=scaled, ns_dtype=ns_matmul_dtype)

    est = _vmem_estimate(HB, m, L, D, itemsize)
    vmem_limit = int(min(vmem_cap, max(32 * 2**20, est * 3 // 2)))

    out = pl.pallas_call(
        kernel,
        out_shape=jax.ShapeDtypeStruct((NG, HBL, D), q.dtype),
        grid=(NG,),                              # single flattened parallel axis
        in_specs=const_specs + [blk, blk, blk],
        out_specs=blk,
        compiler_params=pltpu.CompilerParams(
            dimension_semantics=("parallel",),
            vmem_limit_bytes=vmem_limit),
    )(*consts, qs, ks, vs)

    out = out.reshape(N, H, L, D)
    return jnp.transpose(out, (0, 2, 1, 3))


def nystrom_attention_ref(q, k, v, *, num_landmarks, num_iters=6, scaled=True):
    """Pure-JAX reference mirroring the PyTorch nystrom_attention semantics."""
    N, L, H, D = q.shape
    m = num_landmarks
    if scaled:
        scale = D ** (-0.25)
        q = q * scale
        k = k * scale
    q_lm = q.reshape(N, m, L // m, H, D).mean(axis=2)
    k_lm = k.reshape(N, m, L // m, H, D).mean(axis=2)
    k1 = jax.nn.softmax(jnp.einsum('bmhd,bnhd->bhmn', q, k_lm), axis=-1)
    k2 = jax.nn.softmax(jnp.einsum('bmhd,bnhd->bhmn', q_lm, k_lm), axis=-1)
    k3 = jax.nn.softmax(jnp.einsum('bmhd,bnhd->bhmn', q_lm, k), axis=-1)

    I = jnp.eye(m, dtype=q.dtype)
    V = jnp.swapaxes(k2, -1, -2) / jnp.max(jnp.sum(k2, axis=-2), axis=-1)[..., None, None]
    for _ in range(num_iters):
        KV = k2 @ V
        V = (0.25 * V) @ (13.0 * I - KV @ (15.0 * I - KV @ (7.0 * I - KV)))

    inner = jnp.einsum('bhmn,bnhd->bmhd', k3, v)          # [N, m, H, D]
    out = jnp.einsum('bhmn,bnhd->bmhd', k1 @ V, inner)    # [N, L, H, D]
    return out


if __name__ == "__main__":
    # NystromAttention(scaled=True, dim_last=True, num_landmarks=8, num_iters=6)
    N, L, H, D = 2, 16, 2, 32
    NUM_LANDMARKS = 8

    key = jax.random.PRNGKey(0)
    kq, kk, kv = jax.random.split(key, 3)
    q = jax.random.normal(kq, (N, L, H, D), dtype=jnp.float32)
    k = jax.random.normal(kk, (N, L, H, D), dtype=jnp.float32)
    v = jax.random.normal(kv, (N, L, H, D), dtype=jnp.float32)

    out = nystrom_attention_pallas(q, k, v, num_landmarks=NUM_LANDMARKS, num_iters=6)
    out = jax.block_until_ready(out)

    ref = nystrom_attention_ref(q, k, v, num_landmarks=NUM_LANDMARKS, num_iters=6)
    assert out.shape == (N, L, H, D)
    # Tolerance covers the EUP approx-reciprocal (Newton-refined) normalizations, the
    # q-only scale folding, and the reassociated f32 epilogue.
    assert jnp.allclose(out, ref, rtol=1e-3, atol=1e-3), "mismatch vs reference"

    print("KERNEL_OK")
</pallas_src>

<mosaic_0001>
module attributes {stable_mosaic.version = 11 : i64} {
  func.func @_nystrom_kernel(%arg0: i32, %arg1: memref<16x32xf32, #tpu.memory_space<vmem>>, %arg2: memref<32x16xf32, #tpu.memory_space<vmem>>, %arg3: memref<16x16xf32, #tpu.memory_space<vmem>>, %arg4: memref<16x32xf32, #tpu.memory_space<vmem>>, %arg5: memref<1x32x32xf32, #tpu.memory_space<vmem>>, %arg6: memref<1x32x32xf32, #tpu.memory_space<vmem>>, %arg7: memref<1x32x32xf32, #tpu.memory_space<vmem>>, %arg8: memref<1x32x32xf32, #tpu.memory_space<vmem>>) attributes {dimension_semantics = [#tpu.dimension_semantics<parallel>], iteration_bounds = array<i64: 2>, scalar_prefetch = 0 : i64, scratch_operands = 0 : i64, tpu.core_type = #tpu.core_type<tc>, window_params = [{pipeline_mode = #tpu.pipeline_mode<synchronous>, transform_indices = @transform_0, window_bounds = array<i64: 16, 32>}, {pipeline_mode = #tpu.pipeline_mode<synchronous>, transform_indices = @transform_1, window_bounds = array<i64: 32, 16>}, {pipeline_mode = #tpu.pipeline_mode<synchronous>, transform_indices = @transform_2, window_bounds = array<i64: 16, 16>}, {pipeline_mode = #tpu.pipeline_mode<synchronous>, transform_indices = @transform_3, window_bounds = array<i64: 16, 32>}, {transform_indices = @transform_4, window_bounds = array<i64: 1, 32, 32>}, {transform_indices = @transform_5, window_bounds = array<i64: 1, 32, 32>}, {transform_indices = @transform_6, window_bounds = array<i64: 1, 32, 32>}, {transform_indices = @transform_7, window_bounds = array<i64: 1, 32, 32>}]} {
    %c0 = arith.constant 0 : index
    %c0_0 = arith.constant 0 : index
    %c0_1 = arith.constant 0 : index
    %0 = vector.load %arg5[%c0, %c0_0, %c0_1] : memref<1x32x32xf32, #tpu.memory_space<vmem>>, vector<1x32x32xf32>
    %1 = vector.shape_cast %0 : vector<1x32x32xf32> to vector<32x32xf32>
    %c0_2 = arith.constant 0 : index
    %c0_3 = arith.constant 0 : index
    %c0_4 = arith.constant 0 : index
    %2 = vector.load %arg6[%c0_2, %c0_3, %c0_4] : memref<1x32x32xf32, #tpu.memory_space<vmem>>, vector<1x32x32xf32>
    %3 = vector.shape_cast %2 : vector<1x32x32xf32> to vector<32x32xf32>
    %c0_5 = arith.constant 0 : index
    %c0_6 = arith.constant 0 : index
    %c0_7 = arith.constant 0 : index
    %4 = vector.load %arg7[%c0_5, %c0_6, %c0_7] : memref<1x32x32xf32, #tpu.memory_space<vmem>>, vector<1x32x32xf32>
    %5 = vector.shape_cast %4 : vector<1x32x32xf32> to vector<32x32xf32>
    %cst = arith.constant 0.176776692 : f32
    %6 = vector.broadcast %cst : f32 to vector<32x32xf32>
    %7 = arith.mulf %1, %6 : vector<32x32xf32>
    %c0_8 = arith.constant 0 : index
    %c0_9 = arith.constant 0 : index
    %8 = vector.load %arg1[%c0_8, %c0_9] : memref<16x32xf32, #tpu.memory_space<vmem>>, vector<16x32xf32>
    %cst_10 = arith.constant dense<0.000000e+00> : vector<16x32xf32>
    %9 = tpu.matmul %8, %7, %cst_10 {dimension_numbers = #tpu.dot_dimension_numbers<[1], [0], [0], [1], [0, 0, 1, 1], [], []>} : vector<16x32xf32>, vector<32x32xf32>, vector<16x32xf32> -> vector<16x32xf32>
    %cst_11 = arith.constant 5.000000e-01 : f32
    %10 = vector.broadcast %cst_11 : f32 to vector<16x32xf32>
    %11 = arith.mulf %9, %10 : vector<16x32xf32>
    %cst_12 = arith.constant dense<0.000000e+00> : vector<16x32xf32>
    %12 = tpu.matmul %8, %3, %cst_12 {dimension_numbers = #tpu.dot_dimension_numbers<[1], [0], [0], [1], [0, 0, 1, 1], [], []>} : vector<16x32xf32>, vector<32x32xf32>, vector<16x32xf32> -> vector<16x32xf32>
    %cst_13 = arith.constant 5.000000e-01 : f32
    %13 = vector.broadcast %cst_13 : f32 to vector<16x32xf32>
    %14 = arith.mulf %12, %13 : vector<16x32xf32>
    %c0_14 = arith.constant 0 : index
    %c0_15 = arith.constant 0 : index
    %15 = vector.load %arg2[%c0_14, %c0_15] : memref<32x16xf32, #tpu.memory_space<vmem>>, vector<32x16xf32>
    %c0_16 = arith.constant 0 : index
    %c0_17 = arith.constant 0 : index
    %16 = vector.load %arg3[%c0_16, %c0_17] : memref<16x16xf32, #tpu.memory_space<vmem>>, vector<16x16xf32>
    %c0_18 = arith.constant 0 : index
    %c0_19 = arith.constant 0 : index
    %17 = vector.load %arg4[%c0_18, %c0_19] : memref<16x32xf32, #tpu.memory_space<vmem>>, vector<16x32xf32>
    %cst_20 = arith.constant dense<0.000000e+00> : vector<32x16xf32>
    %18 = tpu.matmul %7, %14, %cst_20 {dimension_numbers = #tpu.dot_dimension_numbers<[1], [1], [0], [0], [0, 0, 1, 0], [], []>} : vector<32x32xf32>, vector<16x32xf32>, vector<32x16xf32> -> vector<32x16xf32>
    %19 = arith.addf %18, %15 : vector<32x16xf32>
    %cst_21 = arith.constant dense<0xFF800000> : vector<32xf32>
    %20 = vector.multi_reduction <maximumf>, %19, %cst_21 [1] : vector<32x16xf32> to vector<32xf32>
    %21 = vector.shape_cast %20 : vector<32xf32> to vector<32x1xf32>
    %22 = vector.broadcast %21 : vector<32x1xf32> to vector<32x16xf32>
    %23 = arith.subf %19, %22 : vector<32x16xf32>
    %24 = math.exp %23 : vector<32x16xf32>
    %cst_22 = arith.constant dense<0.000000e+00> : vector<32xf32>
    %25 = vector.multi_reduction <add>, %24, %cst_22 [1] : vector<32x16xf32> to vector<32xf32>
    %26 = vector.shape_cast %25 : vector<32xf32> to vector<32x1xf32>
    %27 = tpu.reciprocal %26 {approx = true} : vector<32x1xf32> -> vector<32x1xf32>
    %28 = arith.mulf %26, %27 : vector<32x1xf32>
    %cst_23 = arith.constant 2.000000e+00 : f32
    %29 = vector.broadcast %cst_23 : f32 to vector<32x1xf32>
    %30 = arith.subf %29, %28 : vector<32x1xf32>
    %31 = arith.mulf %27, %30 : vector<32x1xf32>
    %32 = vector.broadcast %31 : vector<32x1xf32> to vector<32x16xf32>
    %33 = arith.mulf %24, %32 : vector<32x16xf32>
    %cst_24 = arith.constant dense<0.000000e+00> : vector<16x16xf32>
    %34 = tpu.matmul %11, %14, %cst_24 {dimension_numbers = #tpu.dot_dimension_numbers<[1], [1], [0], [0], [0, 0, 1, 0], [], []>} : vector<16x32xf32>, vector<16x32xf32>, vector<16x16xf32> -> vector<16x16xf32>
    %35 = arith.addf %34, %16 : vector<16x16xf32>
    %cst_25 = arith.constant dense<0xFF800000> : vector<16xf32>
    %36 = vector.multi_reduction <maximumf>, %35, %cst_25 [1] : vector<16x16xf32> to vector<16xf32>
    %37 = vector.shape_cast %36 : vector<16xf32> to vector<16x1xf32>
    %38 = vector.broadcast %37 : vector<16x1xf32> to vector<16x16xf32>
    %39 = arith.subf %35, %38 : vector<16x16xf32>
    %40 = math.exp %39 : vector<16x16xf32>
    %cst_26 = arith.constant dense<0.000000e+00> : vector<16xf32>
    %41 = vector.multi_reduction <add>, %40, %cst_26 [1] : vector<16x16xf32> to vector<16xf32>
    %42 = vector.shape_cast %41 : vector<16xf32> to vector<16x1xf32>
    %43 = tpu.reciprocal %42 {approx = true} : vector<16x1xf32> -> vector<16x1xf32>
    %44 = arith.mulf %42, %43 : vector<16x1xf32>
    %cst_27 = arith.constant 2.000000e+00 : f32
    %45 = vector.broadcast %cst_27 : f32 to vector<16x1xf32>
    %46 = arith.subf %45, %44 : vector<16x1xf32>
    %47 = arith.mulf %43, %46 : vector<16x1xf32>
    %48 = vector.broadcast %47 : vector<16x1xf32> to vector<16x16xf32>
    %49 = arith.mulf %40, %48 : vector<16x16xf32>
    %cst_28 = arith.constant dense<0.000000e+00> : vector<16x32xf32>
    %50 = tpu.matmul %11, %3, %cst_28 {dimension_numbers = #tpu.dot_dimension_numbers<[1], [1], [0], [0], [0, 0, 1, 0], [], []>} : vector<16x32xf32>, vector<32x32xf32>, vector<16x32xf32> -> vector<16x32xf32>
    %51 = arith.addf %50, %17 : vector<16x32xf32>
    %cst_29 = arith.constant dense<0xFF800000> : vector<16xf32>
    %52 = vector.multi_reduction <maximumf>, %51, %cst_29 [1] : vector<16x32xf32> to vector<16xf32>
    %53 = vector.shape_cast %52 : vector<16xf32> to vector<16x1xf32>
    %54 = vector.broadcast %53 : vector<16x1xf32> to vector<16x32xf32>
    %55 = arith.subf %51, %54 : vector<16x32xf32>
    %56 = math.exp %55 : vector<16x32xf32>
    %cst_30 = arith.constant dense<0.000000e+00> : vector<16xf32>
    %57 = vector.multi_reduction <add>, %56, %cst_30 [1] : vector<16x32xf32> to vector<16xf32>
    %58 = vector.shape_cast %57 : vector<16xf32> to vector<16x1xf32>
    %59 = tpu.reciprocal %58 {approx = true} : vector<16x1xf32> -> vector<16x1xf32>
    %60 = arith.mulf %58, %59 : vector<16x1xf32>
    %cst_31 = arith.constant 2.000000e+00 : f32
    %61 = vector.broadcast %cst_31 : f32 to vector<16x1xf32>
    %62 = arith.subf %61, %60 : vector<16x1xf32>
    %63 = arith.mulf %59, %62 : vector<16x1xf32>
    %64 = vector.broadcast %63 : vector<16x1xf32> to vector<16x32xf32>
    %65 = arith.mulf %56, %64 : vector<16x32xf32>
    %cst_32 = arith.constant dense<0.000000e+00> : vector<16x32xf32>
    %66 = tpu.matmul %65, %5, %cst_32 {dimension_numbers = #tpu.dot_dimension_numbers<[1], [0], [0], [1], [0, 0, 1, 1], [], []>} : vector<16x32xf32>, vector<32x32xf32>, vector<16x32xf32> -> vector<16x32xf32>
    %cst_33 = arith.constant dense<0.000000e+00> : vector<16xf32>
    %67 = vector.multi_reduction <add>, %49, %cst_33 [0] : vector<16x16xf32> to vector<16xf32>
    %68 = vector.shape_cast %67 : vector<16xf32> to vector<1x16xf32>
    %cst_34 = arith.constant 0.000000e+00 : f32
    %69 = vector.broadcast %cst_34 : f32 to vector<16x16xf32>
    %70 = arith.cmpf oeq, %16, %69 : vector<16x16xf32>
    %cst_35 = arith.constant -1.000000e+30 : f32
    %71 = vector.shape_cast %68 : vector<1x16xf32> to vector<1x16xf32>
    %72 = vector.broadcast %71 : vector<1x16xf32> to vector<16x16xf32>
    %73 = vector.broadcast %cst_35 : f32 to vector<16x16xf32>
    %74 = arith.select %70, %72, %73 : vector<16x16xi1>, vector<16x16xf32>
    %cst_36 = arith.constant dense<0xFF800000> : vector<16xf32>
    %75 = vector.multi_reduction <maximumf>, %74, %cst_36 [1] : vector<16x16xf32> to vector<16xf32>
    %76 = vector.shape_cast %75 : vector<16xf32> to vector<16x1xf32>
    %77 = tpu.iota {dimensions = array<i32: 0>} : vector<16x16xi32>
    %78 = tpu.iota {dimensions = array<i32: 1>} : vector<16x16xi32>
    %c0_i32 = arith.constant 0 : i32
    %79 = vector.broadcast %c0_i32 : i32 to vector<16x16xi32>
    %80 = arith.addi %77, %79 : vector<16x16xi32>
    %81 = arith.cmpi eq, %80, %78 : vector<16x16xi32>
    %82 = arith.extui %81 : vector<16x16xi1> to vector<16x16xi32>
    %83 = arith.sitofp %82 : vector<16x16xi32> to vector<16x16xf32>
    %84 = tpu.transpose %49, [1, 0] : vector<16x16xf32> -> vector<16x16xf32>
    %85 = tpu.reciprocal %76 {approx = true} : vector<16x1xf32> -> vector<16x1xf32>
    %86 = arith.mulf %76, %85 : vector<16x1xf32>
    %cst_37 = arith.constant 2.000000e+00 : f32
    %87 = vector.broadcast %cst_37 : f32 to vector<16x1xf32>
    %88 = arith.subf %87, %86 : vector<16x1xf32>
    %89 = arith.mulf %85, %88 : vector<16x1xf32>
    %90 = vector.broadcast %89 : vector<16x1xf32> to vector<16x16xf32>
    %91 = arith.mulf %84, %90 : vector<16x16xf32>
    %cst_38 = arith.constant dense<0.000000e+00> : vector<16x16xf32>
    %92 = tpu.matmul %49, %91, %cst_38 {dimension_numbers = #tpu.dot_dimension_numbers<[1], [0], [0], [1], [0, 0, 1, 1], [], []>} : vector<16x16xf32>, vector<16x16xf32>, vector<16x16xf32> -> vector<16x16xf32>
    %cst_39 = arith.constant 7.000000e+00 : f32
    %93 = vector.broadcast %cst_39 : f32 to vector<16x16xf32>
    %94 = arith.mulf %93, %83 : vector<16x16xf32>
    %95 = arith.subf %94, %92 : vector<16x16xf32>
    %cst_40 = arith.constant 1.500000e+01 : f32
    %96 = vector.broadcast %cst_40 : f32 to vector<16x16xf32>
    %97 = arith.mulf %96, %83 : vector<16x16xf32>
    %cst_41 = arith.constant dense<0.000000e+00> : vector<16x16xf32>
    %98 = tpu.matmul %92, %95, %cst_41 {dimension_numbers = #tpu.dot_dimension_numbers<[1], [0], [0], [1], [0, 0, 1, 1], [], []>} : vector<16x16xf32>, vector<16x16xf32>, vector<16x16xf32> -> vector<16x16xf32>
    %99 = arith.subf %97, %98 : vector<16x16xf32>
    %cst_42 = arith.constant 1.300000e+01 : f32
    %100 = vector.broadcast %cst_42 : f32 to vector<16x16xf32>
    %101 = arith.mulf %100, %83 : vector<16x16xf32>
    %cst_43 = arith.constant dense<0.000000e+00> : vector<16x16xf32>
    %102 = tpu.matmul %92, %99, %cst_43 {dimension_numbers = #tpu.dot_dimension_numbers<[1], [0], [0], [1], [0, 0, 1, 1], [], []>} : vector<16x16xf32>, vector<16x16xf32>, vector<16x16xf32> -> vector<16x16xf32>
    %103 = arith.subf %101, %102 : vector<16x16xf32>
    %cst_44 = arith.constant 2.500000e-01 : f32
    %104 = vector.broadcast %cst_44 : f32 to vector<16x16xf32>
    %105 = arith.mulf %104, %91 : vector<16x16xf32>
    %cst_45 = arith.constant dense<0.000000e+00> : vector<16x16xf32>
    %106 = tpu.matmul %105, %103, %cst_45 {dimension_numbers = #tpu.dot_dimension_numbers<[1], [0], [0], [1], [0, 0, 1, 1], [], []>} : vector<16x16xf32>, vector<16x16xf32>, vector<16x16xf32> -> vector<16x16xf32>
    %cst_46 = arith.constant dense<0.000000e+00> : vector<16x16xf32>
    %107 = tpu.matmul %49, %106, %cst_46 {dimension_numbers = #tpu.dot_dimension_numbers<[1], [0], [0], [1], [0, 0, 1, 1], [], []>} : vector<16x16xf32>, vector<16x16xf32>, vector<16x16xf32> -> vector<16x16xf32>
    %cst_47 = arith.constant 7.000000e+00 : f32
    %108 = vector.broadcast %cst_47 : f32 to vector<16x16xf32>
    %109 = arith.mulf %108, %83 : vector<16x16xf32>
    %110 = arith.subf %109, %107 : vector<16x16xf32>
    %cst_48 = arith.constant 1.500000e+01 : f32
    %111 = vector.broadcast %cst_48 : f32 to vector<16x16xf32>
    %112 = arith.mulf %111, %83 : vector<16x16xf32>
    %cst_49 = arith.constant dense<0.000000e+00> : vector<16x16xf32>
    %113 = tpu.matmul %107, %110, %cst_49 {dimension_numbers = #tpu.dot_dimension_numbers<[1], [0], [0], [1], [0, 0, 1, 1], [], []>} : vector<16x16xf32>, vector<16x16xf32>, vector<16x16xf32> -> vector<16x16xf32>
    %114 = arith.subf %112, %113 : vector<16x16xf32>
    %cst_50 = arith.constant 1.300000e+01 : f32
    %115 = vector.broadcast %cst_50 : f32 to vector<16x16xf32>
    %116 = arith.mulf %115, %83 : vector<16x16xf32>
    %cst_51 = arith.constant dense<0.000000e+00> : vector<16x16xf32>
    %117 = tpu.matmul %107, %114, %cst_51 {dimension_numbers = #tpu.dot_dimension_numbers<[1], [0], [0], [1], [0, 0, 1, 1], [], []>} : vector<16x16xf32>, vector<16x16xf32>, vector<16x16xf32> -> vector<16x16xf32>
    %118 = arith.subf %116, %117 : vector<16x16xf32>
    %cst_52 = arith.constant 2.500000e-01 : f32
    %119 = vector.broadcast %cst_52 : f32 to vector<16x16xf32>
    %120 = arith.mulf %119, %106 : vector<16x16xf32>
    %cst_53 = arith.constant dense<0.000000e+00> : vector<16x16xf32>
    %121 = tpu.matmul %120, %118, %cst_53 {dimension_numbers = #tpu.dot_dimension_numbers<[1], [0], [0], [1], [0, 0, 1, 1], [], []>} : vector<16x16xf32>, vector<16x16xf32>, vector<16x16xf32> -> vector<16x16xf32>
    %cst_54 = arith.constant dense<0.000000e+00> : vector<16x16xf32>
    %122 = tpu.matmul %49, %121, %cst_54 {dimension_numbers = #tpu.dot_dimension_numbers<[1], [0], [0], [1], [0, 0, 1, 1], [], []>} : vector<16x16xf32>, vector<16x16xf32>, vector<16x16xf32> -> vector<16x16xf32>
    %cst_55 = arith.constant 7.000000e+00 : f32
    %123 = vector.broadcast %cst_55 : f32 to vector<16x16xf32>
    %124 = arith.mulf %123, %83 : vector<16x16xf32>
    %125 = arith.subf %124, %122 : vector<16x16xf32>
    %cst_56 = arith.constant 1.500000e+01 : f32
    %126 = vector.broadcast %cst_56 : f32 to vector<16x16xf32>
    %127 = arith.mulf %126, %83 : vector<16x16xf32>
    %cst_57 = arith.constant dense<0.000000e+00> : vector<16x16xf32>
    %128 = tpu.matmul %122, %125, %cst_57 {dimension_numbers = #tpu.dot_dimension_numbers<[1], [0], [0], [1], [0, 0, 1, 1], [], []>} : vector<16x16xf32>, vector<16x16xf32>, vector<16x16xf32> -> vector<16x16xf32>
    %129 = arith.subf %127, %128 : vector<16x16xf32>
    %cst_58 = arith.constant 1.300000e+01 : f32
    %130 = vector.broadcast %cst_58 : f32 to vector<16x16xf32>
    %131 = arith.mulf %130, %83 : vector<16x16xf32>
    %cst_59 = arith.constant dense<0.000000e+00> : vector<16x16xf32>
    %132 = tpu.matmul %122, %129, %cst_59 {dimension_numbers = #tpu.dot_dimension_numbers<[1], [0], [0], [1], [0, 0, 1, 1], [], []>} : vector<16x16xf32>, vector<16x16xf32>, vector<16x16xf32> -> vector<16x16xf32>
    %133 = arith.subf %131, %132 : vector<16x16xf32>
    %cst_60 = arith.constant 2.500000e-01 : f32
    %134 = vector.broadcast %cst_60 : f32 to vector<16x16xf32>
    %135 = arith.mulf %134, %121 : vector<16x16xf32>
    %cst_61 = arith.constant dense<0.000000e+00> : vector<16x16xf32>
    %136 = tpu.matmul %135, %133, %cst_61 {dimension_numbers = #tpu.dot_dimension_numbers<[1], [0], [0], [1], [0, 0, 1, 1], [], []>} : vector<16x16xf32>, vector<16x16xf32>, vector<16x16xf32> -> vector<16x16xf32>
    %cst_62 = arith.constant dense<0.000000e+00> : vector<16x16xf32>
    %137 = tpu.matmul %49, %136, %cst_62 {dimension_numbers = #tpu.dot_dimension_numbers<[1], [0], [0], [1], [0, 0, 1, 1], [], []>} : vector<16x16xf32>, vector<16x16xf32>, vector<16x16xf32> -> vector<16x16xf32>
    %cst_63 = arith.constant 7.000000e+00 : f32
    %138 = vector.broadcast %cst_63 : f32 to vector<16x16xf32>
    %139 = arith.mulf %138, %83 : vector<16x16xf32>
    %140 = arith.subf %139, %137 : vector<16x16xf32>
    %cst_64 = arith.constant 1.500000e+01 : f32
    %141 = vector.broadcast %cst_64 : f32 to vector<16x16xf32>
    %142 = arith.mulf %141, %83 : vector<16x16xf32>
    %cst_65 = arith.constant dense<0.000000e+00> : vector<16x16xf32>
    %143 = tpu.matmul %137, %140, %cst_65 {dimension_numbers = #tpu.dot_dimension_numbers<[1], [0], [0], [1], [0, 0, 1, 1], [], []>} : vector<16x16xf32>, vector<16x16xf32>, vector<16x16xf32> -> vector<16x16xf32>
    %144 = arith.subf %142, %143 : vector<16x16xf32>
    %cst_66 = arith.constant 1.300000e+01 : f32
    %145 = vector.broadcast %cst_66 : f32 to vector<16x16xf32>
    %146 = arith.mulf %145, %83 : vector<16x16xf32>
    %cst_67 = arith.constant dense<0.000000e+00> : vector<16x16xf32>
    %147 = tpu.matmul %137, %144, %cst_67 {dimension_numbers = #tpu.dot_dimension_numbers<[1], [0], [0], [1], [0, 0, 1, 1], [], []>} : vector<16x16xf32>, vector<16x16xf32>, vector<16x16xf32> -> vector<16x16xf32>
    %148 = arith.subf %146, %147 : vector<16x16xf32>
    %cst_68 = arith.constant 2.500000e-01 : f32
    %149 = vector.broadcast %cst_68 : f32 to vector<16x16xf32>
    %150 = arith.mulf %149, %136 : vector<16x16xf32>
    %cst_69 = arith.constant dense<0.000000e+00> : vector<16x16xf32>
    %151 = tpu.matmul %150, %148, %cst_69 {dimension_numbers = #tpu.dot_dimension_numbers<[1], [0], [0], [1], [0, 0, 1, 1], [], []>} : vector<16x16xf32>, vector<16x16xf32>, vector<16x16xf32> -> vector<16x16xf32>
    %cst_70 = arith.constant dense<0.000000e+00> : vector<16x16xf32>
    %152 = tpu.matmul %49, %151, %cst_70 {dimension_numbers = #tpu.dot_dimension_numbers<[1], [0], [0], [1], [0, 0, 1, 1], [], []>} : vector<16x16xf32>, vector<16x16xf32>, vector<16x16xf32> -> vector<16x16xf32>
    %cst_71 = arith.constant 7.000000e+00 : f32
    %153 = vector.broadcast %cst_71 : f32 to vector<16x16xf32>
    %154 = arith.mulf %153, %83 : vector<16x16xf32>
    %155 = arith.subf %154, %152 : vector<16x16xf32>
    %cst_72 = arith.constant 1.500000e+01 : f32
    %156 = vector.broadcast %cst_72 : f32 to vector<16x16xf32>
    %157 = arith.mulf %156, %83 : vector<16x16xf32>
    %cst_73 = arith.constant dense<0.000000e+00> : vector<16x16xf32>
    %158 = tpu.matmul %152, %155, %cst_73 {dimension_numbers = #tpu.dot_dimension_numbers<[1], [0], [0], [1], [0, 0, 1, 1], [], []>} : vector<16x16xf32>, vector<16x16xf32>, vector<16x16xf32> -> vector<16x16xf32>
    %159 = arith.subf %157, %158 : vector<16x16xf32>
    %cst_74 = arith.constant 1.300000e+01 : f32
    %160 = vector.broadcast %cst_74 : f32 to vector<16x16xf32>
    %161 = arith.mulf %160, %83 : vector<16x16xf32>
    %cst_75 = arith.constant dense<0.000000e+00> : vector<16x16xf32>
    %162 = tpu.matmul %152, %159, %cst_75 {dimension_numbers = #tpu.dot_dimension_numbers<[1], [0], [0], [1], [0, 0, 1, 1], [], []>} : vector<16x16xf32>, vector<16x16xf32>, vector<16x16xf32> -> vector<16x16xf32>
    %163 = arith.subf %161, %162 : vector<16x16xf32>
    %cst_76 = arith.constant 2.500000e-01 : f32
    %164 = vector.broadcast %cst_76 : f32 to vector<16x16xf32>
    %165 = arith.mulf %164, %151 : vector<16x16xf32>
    %cst_77 = arith.constant dense<0.000000e+00> : vector<16x16xf32>
    %166 = tpu.matmul %165, %163, %cst_77 {dimension_numbers = #tpu.dot_dimension_numbers<[1], [0], [0], [1], [0, 0, 1, 1], [], []>} : vector<16x16xf32>, vector<16x16xf32>, vector<16x16xf32> -> vector<16x16xf32>
    %cst_78 = arith.constant dense<0.000000e+00> : vector<16x16xf32>
    %167 = tpu.matmul %49, %166, %cst_78 {dimension_numbers = #tpu.dot_dimension_numbers<[1], [0], [0], [1], [0, 0, 1, 1], [], []>} : vector<16x16xf32>, vector<16x16xf32>, vector<16x16xf32> -> vector<16x16xf32>
    %cst_79 = arith.constant 7.000000e+00 : f32
    %168 = vector.broadcast %cst_79 : f32 to vector<16x16xf32>
    %169 = arith.mulf %168, %83 : vector<16x16xf32>
    %170 = arith.subf %169, %167 : vector<16x16xf32>
    %cst_80 = arith.constant 1.500000e+01 : f32
    %171 = vector.broadcast %cst_80 : f32 to vector<16x16xf32>
    %172 = arith.mulf %171, %83 : vector<16x16xf32>
    %cst_81 = arith.constant dense<0.000000e+00> : vector<16x16xf32>
    %173 = tpu.matmul %167, %170, %cst_81 {dimension_numbers = #tpu.dot_dimension_numbers<[1], [0], [0], [1], [0, 0, 1, 1], [], []>} : vector<16x16xf32>, vector<16x16xf32>, vector<16x16xf32> -> vector<16x16xf32>
    %174 = arith.subf %172, %173 : vector<16x16xf32>
    %cst_82 = arith.constant 1.300000e+01 : f32
    %175 = vector.broadcast %cst_82 : f32 to vector<16x16xf32>
    %176 = arith.mulf %175, %83 : vector<16x16xf32>
    %cst_83 = arith.constant dense<0.000000e+00> : vector<16x16xf32>
    %177 = tpu.matmul %167, %174, %cst_83 {dimension_numbers = #tpu.dot_dimension_numbers<[1], [0], [0], [1], [0, 0, 1, 1], [], []>} : vector<16x16xf32>, vector<16x16xf32>, vector<16x16xf32> -> vector<16x16xf32>
    %178 = arith.subf %176, %177 : vector<16x16xf32>
    %cst_84 = arith.constant 2.500000e-01 : f32
    %179 = vector.broadcast %cst_84 : f32 to vector<16x16xf32>
    %180 = arith.mulf %179, %166 : vector<16x16xf32>
    %cst_85 = arith.constant dense<0.000000e+00> : vector<16x16xf32>
    %181 = tpu.matmul %180, %178, %cst_85 {dimension_numbers = #tpu.dot_dimension_numbers<[1], [0], [0], [1], [0, 0, 1, 1], [], []>} : vector<16x16xf32>, vector<16x16xf32>, vector<16x16xf32> -> vector<16x16xf32>
    %cst_86 = arith.constant dense<0.000000e+00> : vector<16x32xf32>
    %182 = tpu.matmul %181, %66, %cst_86 {dimension_numbers = #tpu.dot_dimension_numbers<[1], [0], [0], [1], [0, 0, 1, 1], [], []>} : vector<16x16xf32>, vector<16x32xf32>, vector<16x32xf32> -> vector<16x32xf32>
    %cst_87 = arith.constant dense<0.000000e+00> : vector<32x32xf32>
    %183 = tpu.matmul %33, %182, %cst_87 {dimension_numbers = #tpu.dot_dimension_numbers<[1], [0], [0], [1], [0, 0, 1, 1], [], []>} : vector<32x16xf32>, vector<16x32xf32>, vector<32x32xf32> -> vector<32x32xf32>
    %c0_88 = arith.constant 0 : index
    %c0_89 = arith.constant 0 : index
    %c0_90 = arith.constant 0 : index
    %184 = vector.load %arg8[%c0_88, %c0_89, %c0_90] : memref<1x32x32xf32, #tpu.memory_space<vmem>>, vector<1x32x32xf32>
    %185 = vector.shape_cast %184 : vector<1x32x32xf32> to vector<32x32xf32>
    %186 = vector.shape_cast %183 : vector<32x32xf32> to vector<1x32x32xf32>
    tpu.vector_store %arg8[%c0_88, %c0_89, %c0_90], %186 {strides = array<i32>} : memref<1x32x32xf32, #tpu.memory_space<vmem>>, vector<1x32x32xf32>,
    return
  }
  func.func @transform_0(%arg0: i32) -> (i32, i32) {
    %c0_i32 = arith.constant 0 : i32
    %c0_i32_0 = arith.constant 0 : i32
    %c0_i32_1 = arith.constant 0 : i32
    return %c0_i32, %c0_i32_0 : i32, i32
  }
  func.func @transform_1(%arg0: i32) -> (i32, i32) {
    %c0_i32 = arith.constant 0 : i32
    %c0_i32_0 = arith.constant 0 : i32
    %c0_i32_1 = arith.constant 0 : i32
    return %c0_i32, %c0_i32_0 : i32, i32
  }
  func.func @transform_2(%arg0: i32) -> (i32, i32) {
    %c0_i32 = arith.constant 0 : i32
    %c0_i32_0 = arith.constant 0 : i32
    %c0_i32_1 = arith.constant 0 : i32
    return %c0_i32, %c0_i32_0 : i32, i32
  }
  func.func @transform_3(%arg0: i32) -> (i32, i32) {
    %c0_i32 = arith.constant 0 : i32
    %c0_i32_0 = arith.constant 0 : i32
    %c0_i32_1 = arith.constant 0 : i32
    return %c0_i32, %c0_i32_0 : i32, i32
  }
  func.func @transform_4(%arg0: i32) -> (i32, i32, i32) {
    %c0_i32 = arith.constant 0 : i32
    %c0_i32_0 = arith.constant 0 : i32
    %c0_i32_1 = arith.constant 0 : i32
    return %arg0, %c0_i32, %c0_i32_0 : i32, i32, i32
  }
  func.func @transform_5(%arg0: i32) -> (i32, i32, i32) {
    %c0_i32 = arith.constant 0 : i32
    %c0_i32_0 = arith.constant 0 : i32
    %c0_i32_1 = arith.constant 0 : i32
    return %arg0, %c0_i32, %c0_i32_0 : i32, i32, i32
  }
  func.func @transform_6(%arg0: i32) -> (i32, i32, i32) {
    %c0_i32 = arith.constant 0 : i32
    %c0_i32_0 = arith.constant 0 : i32
    %c0_i32_1 = arith.constant 0 : i32
    return %arg0, %c0_i32, %c0_i32_0 : i32, i32, i32
  }
  func.func @transform_7(%arg0: i32) -> (i32, i32, i32) {
    %c0_i32 = arith.constant 0 : i32
    %c0_i32_0 = arith.constant 0 : i32
    %c0_i32_1 = arith.constant 0 : i32
    return %arg0, %c0_i32, %c0_i32_0 : i32, i32, i32
  }
}

</mosaic_0001>

<bundles_post_ra>
// kernel: tpu_custom_call.1
= control target key start
LH: loop header
LB: loop body
LE: loop exit
PB: predicated region body
PF: predicated region fallthrough
CT: control target
= control target key end

     0   :  { %s4634_s0 = inlined_call_operand.vmem [shape: f32[16,32], index: 0, kind: input, shape index: {}]   ;;  %s4635_s1 = inlined_call_operand.vmem [shape: f32[32,16], index: 1, kind: input, shape index: {}]   ;;  %s4636_s2 = inlined_call_operand.vmem [shape: f32[16,16], index: 2, kind: input, shape index: {}]   ;;  %s4637_s3 = inlined_call_operand.vmem [shape: f32[16,32], index: 3, kind: input, shape index: {}]   ;;  %s4638_s4 = inlined_call_operand.hbm [shape: f32[2,32,32], index: 4, kind: input, shape index: {}]   ;;  %s4639_s5 = inlined_call_operand.hbm [shape: f32[2,32,32], index: 5, kind: input, shape index: {}]   ;;  %s4640_s6 = inlined_call_operand.hbm [shape: f32[2,32,32], index: 6, kind: input, shape index: {}]   ;;  %s4641_s7 = inlined_call_operand.hbm [shape: f32[2,32,32], index: 7, kind: output, shape index: {}]  }
   0x1   :  { %4653 = sst [smem:[#allocation16_spill]] %s4638_s4 }
   0x2   :  { %4654 = sst [smem:[#allocation17_spill]] %s4639_s5 }
   0x3   :  { %12 = vsyncpa [#allocation3], 0 }
   0x4   :  { %14 = vsyncpa [#allocation3 + $0x1], 0 }
   0x5   :  { %15 = vsyncpa [#allocation6], 0 }
   0x6   :  { %17 = vsyncpa [#allocation6 + $0x1], 0 }
   0x7   :  { %18 = vsyncpa [#allocation4], 0 }
   0x8   :  { %20 = vsyncpa [#allocation4 + $0x1], 0  ;;  %s4132_s24 = smov 0   ;;  %s4134_s25 = smov 0  }
   0x9   :  { %s4136_s26 = smov 0   ;;  %s4138_s27 = smov 0  }
   0xa LB: > { %4655 = sst [smem:[#allocation12_spill]] %s4077_s26  ;;  %s4153_s28 = sadd.s32 4294967295, %s4081_s27   ;;  %s4081_s27 = sphi %s4138_s27, %s4677_s27   ;;  %s4077_s26 = sphi %s4136_s26, %s4679_s26   ;;  %s4073_s25 = sphi %s4134_s25, %s4681_s25   ;;  %s4069_s24 = sphi %s4132_s24, %s4680_s24  }
   0xb   : > { %4656 = sst [smem:[#allocation13_spill]] %s4081_s27  ;;  %s3342_s29 = sadd.s32 4294967294, %s4081_s27  }
   0xc   : > { %s4157_s30 = sadd.s32 1, %s4081_s27   ;;  %s117_s8 = sadd.s32 1, %s4077_s26 }
   0xd   : > { %4657 = sst [smem:[#allocation14_spill]] %s4157_s30  ;;  %s114_s9 = ssub.s32 %s4081_s27, %s4157_s30 }
   0xe   : > { %p124_p0 = scmp.ne.s32.totalorder %s4077_s26, %s4073_s25  ;;  %p115_p1 = scmp.eq.s32.totalorder %s114_s9, 0 }
   0xf   : > { %p125_p2 = scmp.eq.s32.totalorder %s4081_s27, 0  ;;  %p130_p3 = scmp.ne.s32.totalorder %s4073_s25, %s4069_s24 }
  0x10   : > { %p131_p4 = scmp.eq.s32.totalorder %s4153_s28, 0  ;;  %p206_p7 = scmp.eq.s32.totalorder %s4153_s28, 1 }
  0x11   : > { %s4169_s10 = scalar_select %p115_p1, %s4077_s26, %s117_s8  }
  0x12   : > { %p126_p5 = por %p125_p2, %p124_p0  ;;  %p4171_p6 = por %p131_p4, %p130_p3 }
  0x13   : > { %4658 = sst [smem:[#allocation15_spill]] %s4169_s10  ;;  %p212_p8 = scmp.eq.s32.totalorder %s3342_s29, 1 }
  0x14   : > { %s4659_s11 = scalar_select %p4171_p6, 1, 0 }
  0x15   : > { %p3854_p10 = scmp.lt.s32.totalorder %s4081_s27, 2  ;;  %p4178_p11 = por %p206_p7, %p124_p0 }
  0x16   : > { %p4182_p12 = por %p212_p8, %p130_p3  ;;  %s4642_s14 = sand.u32 1, %s4077_s26  }
  0x17   : > { %s4660_s12 = scalar_select %p4178_p11, 1, 0 }
  0x18   : > { %s4661_s13 = scalar_select %p4182_p12, 1, 0 }
  0x19   : > { %s4188_s15 = sshll.u32 %s4081_s27, 9  ;;  %s4192_s16 = sshll.u32 %s4642_s14, 5 }
  0x1a   : > { %p4194_p13 = pnand %p3854_p10, %p126_p5  ;;  %s265_s18 = sand.u32 1, %s4081_s27  }
  0x1b   : > { %s4663_s5 = sld [smem:[#allocation17_spill]]  ;;  %s269_s22 = scalar_lea.vmem [#allocation5], %s4192_s16 }
  0x1c   : > { %s276_s23 = sshll.u32 %s269_s22, 4  ;;  %s4209_s29 = scalar_lea.sflag [#allocation6], %s265_s18  ;;  %s4206_s23 = int_to_ptr.vmem [resolvable:$true] %s276_s23 }
  0x1d   : > { %p4215_p2 = pneg %p4194_p13 }
  0x21   : > { %s4203_s21 = scalar_lea.hbm %s4663_s5, %s4188_s15  ;;  %s3934_s22 = scalar_lea.hbm %s4663_s5, 1024 }
  0x22   : > { %s3929_s8 = scalar_lea.hbm %s4203_s21, 512  ;;  %p3935_p5 = scmp.lt.s32.totalorder %s4203_s21, %s4663_s5 }
  0x23   : > { %p3930_p1 = scmp.ne.s32.totalorder %s4203_s21, %s3929_s8  ;;  %p3936_p7 = scmp.lt.s32.totalorder %s3934_s22, %s3929_s8 }
  0x25   : > { %p3932_p3 = pnand %p4215_p2, %p3930_p1  ;;  %p3937_p8 = por %p3936_p7, %p3935_p5 }
  0x27   : > { %p3933_p4 = pneg %p3932_p3 }
  0x29   : > { %p3938_p10 = pnand %p3937_p8, %p3933_p4 }
  0x2b   : > { %3941 = shalt.err (!%p3938_p10)
}
  0x2c   : > { %s3942_s18 = scalar_lea.vmem %s4206_s23, 512  ;;  %s4083_s30 = smov [#allocation5]  }
  0x2d   : > { %p3943_p9 = scmp.ne.s32.totalorder %s4206_s23, %s3942_s18  ;;  %s3947_s19 = sshll.u32 %s4083_s30, 4  ;;  %s3948_s19 = int_to_ptr.vmem [resolvable:$false] %s3947_s19 }
  0x2e   : > { %s3949_s20 = scalar_lea.vmem %s3948_s19, 1024  ;;  %p3950_p0 = scmp.lt.s32.totalorder %s4206_s23, %s3948_s19 }
  0x2f   : > { %p3945_p1 = pnand %p3943_p9, %p4215_p2  ;;  %p3951_p12 = scmp.lt.s32.totalorder %s3949_s20, %s3942_s18 }
  0x31   : > { %p3946_p3 = pneg %p3945_p1  ;;  %p3952_p11 = por %p3951_p12, %p3950_p0 }
  0x33   : > { %p3953_p6 = pnand %p3952_p11, %p3946_p3 }
  0x35   : > { %3956 = shalt.err (!%p3953_p6)
}
  0x36   : > { %s4647_s10 = smov 128   ;;  %s4649_s14 = smov 8  }
  0x37   : > { %3846 = dma.hbm_to_vmem [thread:$0]  (!%p4194_p13), %s4203_s21, 512, %s4206_s23, %s4209_s29, %s4647_s10, %s4647_s10, %s4649_s14  }
  0x38   : > { %p305_p9 = scmp.lt.s32.totalorder %s4081_s27, 3  ;;  %s4665_s4 = sld [smem:[#allocation16_spill]] }
  0x39   : > { %p4666_p6 = scmp.ge.s32.totalorder %s4081_s27, 1  ;;  %s248_s19 = scalar_lea.vmem [#allocation2], %s4192_s16 }
  0x3a   : > { %s255_s20 = sshll.u32 %s248_s19, 4  ;;  %s4668_s5 = sand.u32 1, %s4077_s26   ;;  %s4255_s20 = int_to_ptr.vmem [resolvable:$true] %s255_s20 }
  0x3b   : > { %p4250_p11 = pnand %p4666_p6, %p305_p9  ;;  %s245_s21 = scalar_lea.sflag [#allocation3], %s4668_s5 }
  0x3d   : > { %s4667_s18 = scalar_select %p4250_p11, 1, 0 }
  0x3e   : > { %s4246_s22 = scalar_lea.hbm %s4665_s4, %s4188_s15  ;;  %s3962_s10 = scalar_lea.hbm %s4665_s4, 1024 }
  0x3f   : > { %s3957_s23 = scalar_lea.hbm %s4246_s22, 512  ;;  %p3963_p5 = scmp.lt.s32.totalorder %s4246_s22, %s4665_s4 }
  0x40   : > { %p3958_p12 = scmp.ne.s32.totalorder %s4246_s22, %s3957_s23  ;;  %p3964_p7 = scmp.lt.s32.totalorder %s3962_s10, %s3957_s23 }
  0x42   : > { %p3960_p0 = pnand %p3958_p12, %p4215_p2  ;;  %p3965_p8 = por %p3964_p7, %p3963_p5 }
  0x44   : > { %p3961_p4 = pneg %p3960_p0 }
  0x46   : > { %p3966_p10 = pnand %p3965_p8, %p3961_p4 }
  0x48   : > { %3969 = shalt.err (!%p3966_p10)
}
  0x49   : > { %s3970_s5 = scalar_lea.vmem %s4255_s20, 512  ;;  %s4086_s19 = smov [#allocation2]  }
  0x4a   : > { %p3971_p1 = scmp.ne.s32.totalorder %s4255_s20, %s3970_s5  ;;  %s3975_s30 = sshll.u32 %s4086_s19, 4  ;;  %s3976_s30 = int_to_ptr.vmem [resolvable:$false] %s3975_s30 }
  0x4b   : > { %s3977_s8 = scalar_lea.vmem %s3976_s30, 1024  ;;  %p3978_p6 = scmp.lt.s32.totalorder %s4255_s20, %s3976_s30 }
  0x4c   : > { %p3973_p3 = pnand %p3971_p1, %p4215_p2  ;;  %p3979_p12 = scmp.lt.s32.totalorder %s3977_s8, %s3970_s5 }
  0x4e   : > { %p3974_p9 = pneg %p3973_p3  ;;  %p3980_p0 = por %p3979_p12, %p3978_p6 }
  0x50   : > { %p3981_p11 = pnand %p3980_p0, %p3974_p9 }
  0x52   : > { %3984 = shalt.err (!%p3981_p11)
}
  0x53   : > { %s4669_s27 = smov 8   ;;  %s4670_s10 = smov 128  }
  0x54   : > { %3843 = dma.hbm_to_vmem [thread:$0]  (!%p4194_p13), %s4246_s22, 512, %s4255_s20, %s245_s21, %s4670_s10, %s4670_s10, %s4669_s27  }
  0x55   : > { %s4286_s19 = scalar_lea.hbm %s4640_s6, %s4188_s15  ;;  %s290_s5 = scalar_lea.vmem [#allocation7], %s4192_s16 }
  0x56   : > { %s297_s30 = sshll.u32 %s290_s5, 4  ;;  %s3985_s8 = scalar_lea.hbm %s4286_s19, 512  ;;  %s298_s30 = int_to_ptr.vmem [resolvable:$true] %s297_s30 }
  0x57   : > { %p3986_p11 = scmp.ne.s32.totalorder %s4286_s19, %s3985_s8  ;;  %s3990_s22 = scalar_lea.hbm %s4640_s6, 1024 }
  0x58   : > { %p3991_p7 = scmp.lt.s32.totalorder %s4286_s19, %s4640_s6  ;;  %p3992_p8 = scmp.lt.s32.totalorder %s3990_s22, %s3985_s8 }
  0x59   : > { %p3988_p4 = pnand %p3986_p11, %p4215_p2 }
  0x5a   : > { %p3993_p10 = por %p3992_p8, %p3991_p7 }
  0x5b   : > { %p3989_p5 = pneg %p3988_p4 }
  0x5d   : > { %p3994_p1 = pnand %p3993_p10, %p3989_p5 }
  0x5f   : > { %3997 = shalt.err (!%p3994_p1)
}
  0x60   : > { %s3998_s15 = scalar_lea.vmem %s298_s30, 512  ;;  %s4087_s16 = smov [#allocation7]  }
  0x61   : > { %p3999_p3 = scmp.ne.s32.totalorder %s298_s30, %s3998_s15  ;;  %s4003_s14 = sshll.u32 %s4087_s16, 4  ;;  %s4004_s14 = int_to_ptr.vmem [resolvable:$false] %s4003_s14 }
  0x62   : > { %s4005_s23 = scalar_lea.vmem %s4004_s14, 1024  ;;  %p4006_p12 = scmp.lt.s32.totalorder %s298_s30, %s4004_s14 }
  0x63   : > { %p4001_p9 = pnand %p3999_p3, %p4215_p2  ;;  %p4007_p0 = scmp.lt.s32.totalorder %s4005_s23, %s3998_s15 }
  0x65   : > { %p4002_p6 = pneg %p4001_p9  ;;  %p4008_p11 = por %p4007_p0, %p4006_p12 }
  0x67   : > { %p4009_p4 = pnand %p4008_p11, %p4002_p6 }
  0x69   : > { %4012 = shalt.err (!%p4009_p4)
}
  0x6a   : > { %3849 = dma.hbm_to_vmem [thread:$0]  (!%p4194_p13), %s4286_s19, 512, %s298_s30, %s4209_s29, %s4670_s10, %s4670_s10, %s4669_s27  }
  0x6b   : > { %p4671_p2 = scmp.ne.s32.totalorder %s4667_s18, 0 }
  0x6c   : > { %s4312_s4 = sand.u32 (!%p4671_p2), 1, %s4073_s25   ;;  %p4672_p5 = scmp.ne.s32.totalorder (!%p4671_p2), %s4659_s11, 0 }
  0x6d   : > { %309 = sbr.rel (%p4671_p2) target bundleno = 6220 (0x184c), region = 48  ;;  %s4315_s26 = sshll.u32 (!%p4671_p2), %s4312_s4, 5 }
  0x6e   : > { %s312_s9 = scalar_lea.sflag (!%p4671_p2), [#allocation3], %s4312_s4  ;;  %s315_s17 = scalar_lea.vmem (!%p4671_p2), [#allocation2], %s4315_s26 }
  0x72   : > { %4056 = dma.done.wait (%p4672_p5), %s312_s9, 512  }
  0x73   : > { %4058 = vsyncadd (%p4672_p5), %s312_s9, 4294966784  ;;  %s320_s29 = sand.u32 1, %s4153_s28   ;;  %s324_s27 = scalar_lea.vmem [#allocation5], %s4315_s26 }
  0x74   : > { %s321_s18 = scalar_lea.sflag [#allocation6], %s320_s29 }
  0x75   : > { %4060 = dma.done.wait (%p4672_p5), %s321_s18, 1024  }
  0x76   : > { %4062 = vsyncadd (%p4672_p5), %s321_s18, 4294966272  ;;  %v381_v0 = vld [vmem:[%s324_s27 + $0x18] sm:$0xff]  ;;  %v380_v1 = vld [vmem:[%s324_s27 + $0x10] sm:$0xff]  ;;  %vm392_vm0 = vcmask 261120   ;;  %vm664_vm1 = vcmask 130048   ;;  %s333_s19 = scalar_lea.vmem [#allocation7], %s4315_s26 }
  0x77   : > { %v377_v2 = vld [vmem:[%s315_s17 + $0x18] sm:$0xff]  ;;  %3597 = vmatprep.subr.mxu1 %v381_v0  ;;  %v376_v4 = vld [vmem:[%s315_s17 + $0x10] sm:$0xff]  ;;  %v379_v5 = vld [vmem:[%s324_s27 + $0x8] sm:$0xff]  ;;  %s373_s5 = scalar_lea.vmem [#allocation8], %s4315_s26  ;;  %s3445_s8 = sshll.u32 %s4153_s28, 9 }
  0x78   : > { %v389_v3 = vmul.f32 0.17677669, %v377_v2  ;;  %3598 = vmatpush3.msra.mxu1 %v381_v0  ;;  %v388_v6 = vmul.f32 0.17677669, %v376_v4  ;;  %v375_v7 = vld [vmem:[%s315_s17 + $0x8] sm:$0xff]  ;;  %v374_v9 = vld [vmem:[%s315_s17] sm:$0xff]  ;;  %s4589_s21 = scalar_lea.hbm %s4641_s7, %s3445_s8 }
  0x79   : > { %3599 = vmatprep.subr.mxu1 %v380_v1  ;;  %v387_v8 = vmul.f32 0.17677669, %v375_v7  ;;  %v378_v10 = vld [vmem:[%s324_s27] sm:$0xff]  ;;  %v391_v12 = vld [vmem:[%s4634_s0 + $0x8] sm:$0xff]  ;;  %v386_v13 = vmul.f32 0.17677669, %v374_v9 }
  0x7a   : > { %3586 = vmatprep.subr.mxu0 %v389_v3  ;;  %3600 = vmatpush3.msra.mxu1 %v380_v1  ;;  %v390_v11 = vld [vmem:[%s4634_s0] sm:$0xff]  ;;  %v4373_v25 = vld [vmem:[%s4636_s2 + $0x8] sm:$0xff]  ;;  %s3226_s30 = sshll.u32 %s373_s5, 4  ;;  %s3213_s28 = scalar_lea.sflag [#allocation4], %s4312_s4  ;;  %s4583_s30 = int_to_ptr.vmem [resolvable:$true] %s3226_s30 }
  0x7b   : > { %3587 = vmatpush3.msra.mxu0 %v389_v3  ;;  %3601 = vmatprep.subr.mxu1 %v379_v5  ;;  %v4366_v23 = vld [vmem:[%s4636_s2] sm:$0xff]  ;;  %v560_v50 = vld [vmem:[%s4637_s3 + $0x8] sm:$0xff]  ;;  %vm1036_vm3 = vcmp.eq.f32.partialorder %v4373_v25, 0.0  ;;  %s4013_s26 = scalar_lea.vmem %s4583_s30, 512  ;;  %p4673_p7 = scmp.ne.s32.totalorder %s4660_s12, 0 }
  0x7c   : > { %3588 = vmatprep.subr.mxu0 %v388_v6  ;;  %3602 = vmatpush3.msra.mxu1 %v379_v5  ;;  %v559_v35 = vld [vmem:[%s4637_s3] sm:$0xff]  ;;  %vm1035_vm2 = vcmp.eq.f32.partialorder %v4366_v23, 0.0  ;;  %p4014_p13 = scmp.ne.s32.totalorder %s4583_s30, %s4013_s26  ;;  %s4089_s15 = smov [#allocation8]  }
  0x7d   : > { %3589 = vmatpush3.msra.mxu0 %v388_v6  ;;  %3603 = vmatprep.subr.mxu1 %v378_v10  ;;  %s4017_s16 = sshll.u32 %s4089_s15, 4  ;;  %s4018_s16 = int_to_ptr.vmem [resolvable:$false] %s4017_s16 }
  0x7e   : > { %3590 = vmatprep.subr.mxu0 %v387_v8  ;;  %3604 = vmatpush3.msra.mxu1 %v378_v10  ;;  %p4015_p8 = pnand %p4014_p13, %p4673_p7  ;;  %s4019_s14 = scalar_lea.vmem %s4018_s16, 1024 }
  0x7f   : > { %3605 = vmatprep.mubr.msk.f32.mxu1 %vm392_vm0, %v390_v11  ;;  %3591 = vmatpush3.msra.mxu0 %v387_v8  ;;  %p4020_p1 = scmp.lt.s32.totalorder %s4583_s30, %s4018_s16  ;;  %p4021_p3 = scmp.lt.s32.totalorder %s4019_s14, %s4013_s26 }
  0x80   : > { %3606 = vmatmul.mubr.msk.f32.vlgmr.msra.gmra.mxu1 %vm392_vm0, %v391_v12  ;;  %3592 = vmatprep.subr.mxu0 %v386_v13  ;;  %p4016_p10 = pneg %p4015_p8 }
  0x81   : > { %3594 = vmatprep.mubr.msk.f32.mxu0 %vm392_vm0, %v390_v11  ;;  %3593 = vmatpush3.msra.mxu0 %v386_v13  ;;  %p4022_p9 = por %p4021_p3, %p4020_p1 }
  0x82   : > { %3595 = vmatmul.mubr.msk.f32.vlgmr.msra.gmra.mxu0 %vm392_vm0, %v391_v12 }
  0x83   : > { %3612 = vmatprep.mubr.msk.f32.mxu0 %vm392_vm0, %v386_v13  ;;  %p4023_p6 = pnand %p4022_p9, %p4016_p10 }
 0x140   : > { %v3607_v14 = vpop.f32.mrf.mxu1 }
 0x141   : > { %v552_v15 = vmul.f32 0.5, %v3607_v14 }
 0x142   : > { %v542_v16 = vpop.f32.mrf.mxu1  ;;  %v3596_v18 = vpop.f32.mrf.mxu0 }
 0x143   : > { %v551_v17 = vmul.f32 0.5, %v542_v16  ;;  %3608 = vmatprep.subr.msk.mxu0 %vm392_vm0, %v552_v15  ;;  %3618 = vmatprep.subr.msk.mxu1 %vm392_vm0, %v552_v15  ;;  %v475_v21 = vmul.f32 0.5, %v3596_v18 }
 0x144   : > { %3609 = vmatpush3.xpose.msk.msra.mxu0 %vm392_vm0, %v552_v15  ;;  %3619 = vmatpush3.xpose.msk.msra.mxu1 %vm392_vm0, %v552_v15  ;;  %v465_v19 = vpop.f32.mrf.mxu0 }
 0x145   : > { %3610 = vmatprep.subr.msk.mxu0 %vm392_vm0, %v551_v17  ;;  %3620 = vmatprep.subr.msk.mxu1 %vm392_vm0, %v551_v17  ;;  %v474_v20 = vmul.f32 0.5, %v465_v19 }
 0x147   : > { %3622 = vmatprep.mubr.msk.f32.mxu1 %vm392_vm0, %v474_v20 }
 0x148   : > { %3611 = vmatpush3.xpose.msk.msra.mxu0 %vm392_vm0, %v551_v17  ;;  %3621 = vmatpush3.xpose.msk.msra.mxu1 %vm392_vm0, %v551_v17 }
 0x149   : > { %3625 = vmatprep.subr.msk.mxu0 %vm392_vm0, %v381_v0 }
 0x14b   : > { %3613 = vmatmul.mubr.msk.f32.vlgmr.msra.gmra.mxu0 %vm392_vm0, %v387_v8  ;;  %3623 = vmatmul.mubr.msk.f32.vlgmr.msra.gmra.mxu1 %vm392_vm0, %v475_v21 }
 0x14c   : > { %3626 = vmatpush3.xpose.msk.msra.mxu0 %vm392_vm0, %v381_v0  ;;  %3615 = vmatprep.mubr.msk.f32.mxu0 %vm392_vm0, %v388_v6 }
 0x14d   : > { %3627 = vmatprep.subr.msk.mxu0 %vm392_vm0, %v380_v1 }
 0x14f   : > { %3616 = vmatmul.mubr.msk.f32.gmra.mxu0 %vm392_vm0, %v389_v3 }
 0x150   : > { %3628 = vmatpush3.xpose.msk.msra.mxu0 %vm392_vm0, %v380_v1  ;;  %3633 = vmatprep.mubr.msk.f32.mxu0 %vm392_vm0, %v474_v20 }
 0x151   : > { %3629 = vmatprep.subr.msk.mxu0 %vm392_vm0, %v379_v5 }
 0x154   : > { %3630 = vmatpush3.xpose.msk.msra.mxu0 %vm392_vm0, %v379_v5 }
 0x155   : > { %3631 = vmatprep.subr.msk.mxu0 %vm392_vm0, %v378_v10 }
 0x158   : > { %3632 = vmatpush3.xpose.msk.msra.mxu0 %vm392_vm0, %v378_v10 }
 0x15b   : > { %3634 = vmatmul.mubr.msk.f32.vlgmr.msra.gmra.mxu0 %vm392_vm0, %v475_v21 }
 0x20b   : > { %v3624_v22 = vpop.f32.mrf.mxu1  ;;  %v4368_v24 = vpop.f32.mrf.mxu0 }
 0x20c   : > { %v799_v29 = vadd.f32 %v3624_v22, %v4373_v25 }
 0x20d   : > { %v793_v26 = vpop.f32.mrf.mxu1  ;;  %v4376_v28 = vpop.f32.mrf.mxu0 }
 0x20e   : > { %v794_v27 = vadd.f32 %v793_v26, %v4366_v23  ;;  %v805_v32 = vsel %vm664_vm1, %v799_v29, -inf  ;;  %v554_v23 = vld [vmem:[%s4635_s1 + $0x8] sm:$0xff] }
 0x20f   : > { %v4380_v31 = vpop.f32.mrf.mxu0  ;;  %v651_v25 = vadd.f32 %v4368_v24, %v554_v23  ;;  %v384_v24 = vld [vmem:[%s333_s19 + $0x10] sm:$0xff] }
 0x210   : > { %v802_v30 = vsel %vm664_vm1, %v794_v27, -inf }
 0x211   : > { %803 = vmax.xlane.f32.xlu0 %v802_v30  ;;  %v4383_v33 = vpop.f32.mrf.mxu0 }
 0x215   : > { %806 = vmax.xlane.f32.xlu0 %v805_v32 }
 0x21b   : > { %v3635_v34 = vpop.f32.mrf.mxu0 }
 0x21c   : > { %v914_v52 = vadd.f32 %v3635_v34, %v560_v50 }
 0x21d   : > { %v908_v36 = vpop.f32.mrf.mxu0 }
 0x21e   : > { %v909_v37 = vadd.f32 %v908_v36, %v559_v35  ;;  %v920_v54 = vsel %vm392_vm0, %v914_v52, -inf }
 0x220   : > { %v917_v38 = vsel %vm392_vm0, %v909_v37, -inf }
 0x221   : > { %918 = vmax.xlane.f32.xlu0 %v917_v38  ;;  %v555_v38 = vld [vmem:[%s4635_s1 + $0x10] sm:$0xff] }
 0x29a   : > { %v804_v39 = vpop.xlane.xlu0 %803 }
 0x29b   : > { %v808_v40 = vsub.f32 %v794_v27, %v804_v39  ;;  %v553_v27 = vld [vmem:[%s4635_s1] sm:$0xff]  ;;  %v668_v39 = vsel %vm664_vm1, %v651_v25, -inf }
 0x29c   : > { %v646_v34 = vadd.f32 %v4376_v28, %v553_v27  ;;  %v656_v28 = vadd.f32 %v4383_v33, %v555_v38  ;;  %v383_v33 = vld [vmem:[%s333_s19 + $0x8] sm:$0xff] }
 0x29d   : > { %v810_v41 = vmul.f32 1.442695, %v808_v40  ;;  %v556_v40 = vld [vmem:[%s4635_s1 + $0x18] sm:$0xff] }
 0x29e   : > { %v807_v42 = vpop.xlane.xlu0 %806 }
 0x29f   : > { %3893 = vpow2.f32 %v810_v41  ;;  %v809_v43 = vsub.f32 %v799_v29, %v807_v42  ;;  %v385_v41 = vld [vmem:[%s333_s19 + $0x18] sm:$0xff]  ;;  %v661_v42 = vadd.f32 %v4380_v31, %v556_v40 }
 0x2a0   : > { %3636 = vmatprep.subr.mxu1 %v385_v41 }
 0x2a1   : > { %v812_v44 = vmul.f32 1.442695, %v809_v43  ;;  %3637 = vmatpush3.msra.mxu1 %v385_v41  ;;  %v671_v43 = vsel %vm664_vm1, %v656_v28, -inf }
 0x2a2   : > { %3638 = vmatprep.subr.mxu1 %v384_v24 }
 0x2a3   : > { %3895 = vpow2.f32 %v812_v44  ;;  %3639 = vmatpush3.msra.mxu1 %v384_v24  ;;  %v382_v44 = vld [vmem:[%s333_s19] sm:$0xff] }
 0x2a4   : > { %3640 = vmatprep.subr.mxu1 %v383_v33 }
 0x2a5   : > { %3641 = vmatpush3.msra.mxu1 %v383_v33 }
 0x2a6   : > { %3642 = vmatprep.subr.mxu1 %v382_v44 }
 0x2a7   : > { %3643 = vmatpush3.msra.mxu1 %v382_v44 }
 0x2aa   : > { %v919_v45 = vpop.xlane.xlu0 %918 }
 0x2ab   : > { %v923_v46 = vsub.f32 %v909_v37, %v919_v45  ;;  %v665_v37 = vsel %vm664_vm1, %v646_v34, -inf  ;;  %v674_v45 = vsel %vm664_vm1, %v661_v42, -inf }
 0x2ac   : > { %v3894_v47 = vpop.eup %3893 }
 0x2ad   : > { %v925_v48 = vmul.f32 1.442695, %v923_v46  ;;  %v814_v49 = vsel %vm664_vm1, %v3894_v47, 0.0 }
 0x2ae   : > { %815 = vadd.xlane.f32.xlu1 %v814_v49 }
 0x2af   : > { %3897 = vpow2.f32 %v925_v48 }
 0x2b0   : > { %v3896_v51 = vpop.eup %3895 }
 0x2b1   : > { %v817_v53 = vsel %vm664_vm1, %v3896_v51, 0.0 }
 0x2b2   : > { %818 = vadd.xlane.f32.xlu1 %v817_v53 }
 0x2b6   : > { %921 = vmax.xlane.f32.xlu1 %v920_v54 }
 0x2bc   : > { %v3898_v55 = vpop.eup %3897 }
 0x2bd   : > { %v929_v56 = vsel %vm392_vm0, %v3898_v55, 0.0 }
 0x2be   : > { %930 = vadd.xlane.f32.xlu0 %v929_v56 }
 0x337   : > { %v816_v57 = vpop.xlane.xlu1 %815 }
 0x338   : > { %3899 = vrcp.f32 %v816_v57 }
 0x33b   : > { %v819_v58 = vpop.xlane.xlu1 %818 }
 0x33c   : > { %3901 = vrcp.f32 %v819_v58 }
 0x33f   : > { %v922_v59 = vpop.xlane.xlu1 %921 }
 0x340   : > { %v924_v60 = vsub.f32 %v914_v52, %v922_v59 }
 0x342   : > { %v927_v61 = vmul.f32 1.442695, %v924_v60 }
 0x344   : > { %3903 = vpow2.f32 %v927_v61 }
 0x345   : > { %v3900_v62 = vpop.eup %3899 }
 0x346   : > { %v822_v63 = vmul.f32 %v3900_v62, %v816_v57 }
 0x347   : > { %v931_v0 = vpop.xlane.xlu0 %930 }
 0x348   : > { %v824_v1 = vsub.f32 2.0, %v822_v63  ;;  %3905 = vrcp.f32 %v931_v0 }
 0x349   : > { %v3902_v2 = vpop.eup %3901 }
 0x34a   : > { %v826_v3 = vmul.f32 %v3900_v62, %v824_v1  ;;  %v823_v4 = vmul.f32 %v3902_v2, %v819_v58 }
 0x34c   : > { %v825_v5 = vsub.f32 2.0, %v823_v4  ;;  %v4396_v6 = vmul.f32 %v3894_v47, %v826_v3 }
 0x34e   : > { %v827_v7 = vmul.f32 %v3902_v2, %v825_v5  ;;  %v1026_v11 = vsel %vm664_vm1, %v4396_v6, 0.0 }
 0x350   : > { %v4398_v8 = vmul.f32 %v3896_v51, %v827_v7 }
 0x351   : > { %v4400_v9 = vpop.eup %3903 }
 0x352   : > { %v932_v10 = vsel %vm392_vm0, %v4400_v9, 0.0  ;;  %v1027_v12 = vsel %vm664_vm1, %v4398_v8, 0.0 }
 0x353   : > { %933 = vadd.xlane.f32.xlu1 %v932_v10  ;;  %v1028_v13 = vadd.f32 %v1027_v12, %v1026_v11 }
 0x355   : > { %v3906_v14 = vpop.eup %3905  ;;  %v1029_v15 = vrot.slane %v1028_v13, 4 }
 0x356   : > { %v937_v16 = vmul.f32 %v3906_v14, %v931_v0 }
 0x357   : > { %v1030_v17 = vadd.f32 %v1029_v15, %v1028_v13 }
 0x358   : > { %v939_v18 = vsub.f32 2.0, %v937_v16 }
 0x359   : > { %v1031_v19 = vrot.slane %v1030_v17, 2 }
 0x35a   : > { %v941_v20 = vmul.f32 %v3906_v14, %v939_v18 }
 0x35b   : > { %v1032_v21 = vadd.f32 %v1031_v19, %v1030_v17 }
 0x35c   : > { %v943_v22 = vmul.f32 %v3898_v55, %v941_v20 }
 0x35d   : > { %v1033_v26 = vrot.slane %v1032_v21, 1 }
 0x35e   : > { %3644 = vmatprep.mubr.msk.f32.mxu1 %vm392_vm0, %v943_v22 }
 0x35f   : > { %v1034_v29 = vadd.f32 %v1033_v26, %v1032_v21  ;;  %v1045_v26 = vlaneseq }
 0x361   : > { %v1037_v30 = vsel %vm1035_vm2, %v1034_v29, -1e+30  ;;  %v1038_v32 = vsel %vm1036_vm3, %v1034_v29, -1e+30  ;;  %v1046_v27 = vshrl.u32 %v1045_v26, 7 }
 0x362   : > { %v1039_v35 = vsel %vm664_vm1, %v1037_v30, -inf  ;;  %v1042_v36 = vsel %vm664_vm1, %v1038_v32, -inf  ;;  %v1049_v30 = vand.u32 127, %v1045_v26 }
 0x363   : > { %1040 = vmax.xlane.f32.xlu1 %v1039_v35  ;;  %1043 = vmax.xlane.f32.xlu0 %v1042_v36  ;;  %v1047_v29 = vadd.s32 8, %v1046_v27 }
 0x364   : > { %vm1050_vm5 = vcmp.eq.s32.totalorder %v1046_v27, %v1049_v30 }
 0x365   : > { %vm1051_vm4 = vcmp.eq.s32.totalorder %v1047_v29, %v1049_v30 }
 0x367   : > { %666 = vmax.xlane.f32.xlu1 %v665_v37 }
 0x36b   : > { %669 = vmax.xlane.f32.xlu1 %v668_v39 }
 0x36f   : > { %672 = vmax.xlane.f32.xlu1 %v671_v43 }
 0x373   : > { %675 = vmax.xlane.f32.xlu1 %v674_v45 }
 0x390   : > { %1056 = vxpose.xlu0.b32.start [1/2] (short) (narrow) %v4396_v6, 16 }
 0x394   : > { %1057 = vxpose.xlu0.b32.end [2/2] (short) (narrow) %v4398_v8, 16 }
 0x3dc   : > { %v934_v46 = vpop.xlane.xlu1 %933 }
 0x3dd   : > { %3907 = vrcp.f32 %v934_v46 }
 0x3ea   : > { %v3908_v31 = vpop.eup %3907 }
 0x3eb   : > { %v938_v47 = vmul.f32 %v3908_v31, %v934_v46 }
 0x3ec   : > { %v1041_v48 = vpop.xlane.xlu1 %1040  ;;  %v1044_v55 = vpop.xlane.xlu0 %1043 }
 0x3ed   : > { %v940_v49 = vsub.f32 2.0, %v938_v47 }
 0x3ef   : > { %v942_v50 = vmul.f32 %v3908_v31, %v940_v49 }
 0x3f0   : > { %v667_v51 = vpop.xlane.xlu1 %666 }
 0x3f1   : > { %v944_v52 = vmul.f32 %v4400_v9, %v942_v50  ;;  %v677_v53 = vsub.f32 %v646_v34, %v667_v51  ;;  %v4088_v34 = vmov 0.0  }
 0x3f2   : > { %v3382_v35 = vsel %vm1051_vm4, 1.0, %v4088_v34  ;;  %v3381_v36 = vsel %vm1050_vm5, 1.0, %v4088_v34 }
 0x3f3   : > { %v681_v54 = vmul.f32 1.442695, %v677_v53  ;;  %3645 = vmatmul.mubr.msk.f32.vlgmr.msra.gmra.mxu1 %vm392_vm0, %v944_v52  ;;  %v4460_v23 = vmul.f32 7.0, %v3382_v35  ;;  %v4464_v37 = vmul.f32 7.0, %v3381_v36  ;;  %v4472_v24 = vmul.f32 15.0, %v3382_v35 }
 0x3f4   : > { %v670_v56 = vpop.xlane.xlu1 %669  ;;  %3651 = vmatprep.mubr.msk.f32.mxu1 %vm664_vm1, %v4396_v6  ;;  %v4481_v46 = vmul.f32 13.0, %v3382_v35  ;;  %v4483_v31 = vmul.f32 13.0, %v3381_v36 }
 0x3f5   : > { %3909 = vpow2.f32 %v681_v54  ;;  %v678_v57 = vsub.f32 %v651_v25, %v670_v56 }
 0x3f6   : > { %3911 = vrcp.f32 %v1044_v55 }
 0x3f7   : > { %v683_v58 = vmul.f32 1.442695, %v678_v57  ;;  %3913 = vrcp.f32 %v1041_v48 }
 0x3f8   : > { %v673_v59 = vpop.xlane.xlu1 %672 }
 0x3f9   : > { %3915 = vpow2.f32 %v683_v58  ;;  %v679_v60 = vsub.f32 %v656_v28, %v673_v59 }
 0x3fb   : > { %v685_v61 = vmul.f32 1.442695, %v679_v60 }
 0x3fc   : > { %v676_v62 = vpop.xlane.xlu1 %675 }
 0x3fd   : > { %3917 = vpow2.f32 %v685_v61  ;;  %v680_v63 = vsub.f32 %v661_v42, %v676_v62  ;;  %v4474_v42 = vmul.f32 15.0, %v3381_v36 }
 0x3ff   : > { %v687_v0 = vmul.f32 1.442695, %v680_v63 }
 0x401   : > { %3919 = vpow2.f32 %v687_v0 }
 0x402   : > { %v4440_v1 = vpop.eup %3909 }
 0x403   : > { %v689_v2 = vsel %vm664_vm1, %v4440_v1, 0.0  ;;  %v3912_v3 = vpop.eup %3911 }
 0x404   : > { %690 = vadd.xlane.f32.xlu1 %v689_v2  ;;  %v3914_v4 = vpop.eup %3913  ;;  %v1091_v7 = vmul.f32 %v3912_v3, %v1044_v55 }
 0x405   : > { %v1090_v10 = vmul.f32 %v3914_v4, %v1041_v48 }
 0x406   : > { %v4444_v5 = vpop.eup %3915  ;;  %v1093_v12 = vsub.f32 2.0, %v1091_v7 }
 0x407   : > { %v692_v9 = vsel %vm664_vm1, %v4444_v5, 0.0  ;;  %v1092_v15 = vsub.f32 2.0, %v1090_v10 }
 0x408   : > { %693 = vadd.xlane.f32.xlu1 %v692_v9  ;;  %v1095_v18 = vmul.f32 %v3912_v3, %v1093_v12 }
 0x409   : > { %v1094_v20 = vmul.f32 %v3914_v4, %v1092_v15 }
 0x40a   : > { %v4448_v11 = vpop.eup %3917 }
 0x40b   : > { %v695_v13 = vsel %vm664_vm1, %v4448_v11, 0.0 }
 0x40c   : > { %696 = vadd.xlane.f32.xlu1 %v695_v13  ;;  %v1072_v14 = vpop.trf.xlu0 }
 0x40d   : > { %v1096_v22 = vmul.f32 %v1094_v20, %v1072_v14 }
 0x40e   : > { %v4452_v16 = vpop.eup %3919 }
 0x40f   : > { %v698_v17 = vsel %vm664_vm1, %v4452_v16, 0.0  ;;  %v1347_v41 = vmul.f32 0.25, %v1096_v22 }
 0x410   : > { %699 = vadd.xlane.f32.xlu1 %v698_v17  ;;  %v1073_v19 = vpop.trf.xlu0 }
 0x411   : > { %v1097_v21 = vmul.f32 %v1095_v18, %v1073_v19 }
 0x413   : > { %3647 = vmatprep.subr.mxu1 %v1097_v21  ;;  %v1348_v51 = vmul.f32 0.25, %v1097_v21 }
 0x414   : > { %3648 = vmatpush3.msra.mxu1 %v1097_v21 }
 0x415   : > { %3649 = vmatprep.subr.mxu1 %v1096_v22 }
 0x416   : > { %3650 = vmatpush3.msra.mxu1 %v1096_v22 }
 0x417   : > { %3652 = vmatmul.mubr.msk.f32.vlgmr.msra.gmra.mxu1 %vm664_vm1, %v4398_v8 }
 0x4b3   : > { %v4458_v32 = vpop.f32.mrf.mxu1 }
 0x4b5   : > { %v4462_v25 = vpop.f32.mrf.mxu1 }
 0x4d7   : > { %v3653_v38 = vpop.f32.mrf.mxu1 }
 0x4d8   : > { %v1182_v28 = vsub.f32 %v4460_v23, %v3653_v38 }
 0x4d9   : > { %v1170_v39 = vpop.f32.mrf.mxu1 }
 0x4da   : > { %v1181_v40 = vsub.f32 %v4464_v37, %v1170_v39  ;;  %3654 = vmatprep.subr.mxu1 %v1182_v28  ;;  %3658 = vmatprep.mubr.msk.f32.mxu1 %vm664_vm1, %v1170_v39 }
 0x4db   : > { %3665 = vmatprep.mubr.msk.f32.mxu0 %vm664_vm1, %v1170_v39  ;;  %3655 = vmatpush3.msra.mxu1 %v1182_v28 }
 0x4dc   : > { %3656 = vmatprep.subr.mxu1 %v1181_v40 }
 0x4dd   : > { %3657 = vmatpush3.msra.mxu1 %v1181_v40 }
 0x4de   : > { %3659 = vmatmul.mubr.msk.f32.vlgmr.msra.gmra.mxu1 %vm664_vm1, %v3653_v38 }
 0x4df   : > { %3672 = vmatprep.mubr.msk.f32.mxu1 %vm664_vm1, %v1347_v41 }
 0x59e   : > { %v3660_v43 = vpop.f32.mrf.mxu1 }
 0x59f   : > { %v1267_v33 = vsub.f32 %v4472_v24, %v3660_v43 }
 0x5a0   : > { %v1257_v44 = vpop.f32.mrf.mxu1 }
 0x5a1   : > { %v1266_v45 = vsub.f32 %v4474_v42, %v1257_v44  ;;  %3661 = vmatprep.subr.mxu0 %v1267_v33 }
 0x5a2   : > { %3662 = vmatpush3.msra.mxu0 %v1267_v33 }
 0x5a3   : > { %3663 = vmatprep.subr.mxu0 %v1266_v45 }
 0x5a4   : > { %3664 = vmatpush3.msra.mxu0 %v1266_v45 }
 0x5a5   : > { %3666 = vmatmul.mubr.msk.f32.vlgmr.msra.gmra.mxu0 %vm664_vm1, %v3653_v38 }
 0x5a6   : > { %3679 = vmatprep.mubr.msk.f32.mxu0 %vm664_vm1, %v4396_v6 }
 0x665   : > { %v3667_v47 = vpop.f32.mrf.mxu0 }
 0x666   : > { %v1346_v48 = vsub.f32 %v4481_v46, %v3667_v47 }
 0x667   : > { %v1336_v49 = vpop.f32.mrf.mxu0 }
 0x668   : > { %v1345_v50 = vsub.f32 %v4483_v31, %v1336_v49  ;;  %3668 = vmatprep.subr.mxu1 %v1346_v48 }
 0x669   : > { %3669 = vmatpush3.msra.mxu1 %v1346_v48 }
 0x66a   : > { %3670 = vmatprep.subr.mxu1 %v1345_v50 }
 0x66b   : > { %3671 = vmatpush3.msra.mxu1 %v1345_v50 }
 0x66c   : > { %3673 = vmatmul.mubr.msk.f32.vlgmr.msra.gmra.mxu1 %vm664_vm1, %v1348_v51 }
 0x72c   : > { %v3674_v52 = vpop.f32.mrf.mxu1 }
 0x72d   : > { %3675 = vmatprep.subr.mxu0 %v3674_v52  ;;  %v1668_v4 = vmul.f32 0.25, %v3674_v52 }
 0x72e   : > { %v1421_v53 = vpop.f32.mrf.mxu1  ;;  %3676 = vmatpush3.msra.mxu0 %v3674_v52 }
 0x72f   : > { %3677 = vmatprep.subr.mxu0 %v1421_v53  ;;  %v1667_v58 = vmul.f32 0.25, %v1421_v53 }
 0x730   : > { %3678 = vmatpush3.msra.mxu0 %v1421_v53 }
 0x731   : > { %3680 = vmatmul.mubr.msk.f32.vlgmr.msra.gmra.mxu0 %vm664_vm1, %v4398_v8 }
 0x7f1   : > { %v3681_v54 = vpop.f32.mrf.mxu0 }
 0x7f2   : > { %v1506_v55 = vsub.f32 %v4460_v23, %v3681_v54 }
 0x7f3   : > { %v1496_v56 = vpop.f32.mrf.mxu0 }
 0x7f4   : > { %v1505_v57 = vsub.f32 %v4464_v37, %v1496_v56  ;;  %3682 = vmatprep.subr.mxu1 %v1506_v55  ;;  %3686 = vmatprep.mubr.msk.f32.mxu1 %vm664_vm1, %v1496_v56 }
 0x7f5   : > { %3693 = vmatprep.mubr.msk.f32.mxu0 %vm664_vm1, %v1496_v56  ;;  %3683 = vmatpush3.msra.mxu1 %v1506_v55 }
 0x7f6   : > { %3684 = vmatprep.subr.mxu1 %v1505_v57 }
 0x7f7   : > { %3685 = vmatpush3.msra.mxu1 %v1505_v57 }
 0x7f8   : > { %3687 = vmatmul.mubr.msk.f32.vlgmr.msra.gmra.mxu1 %vm664_vm1, %v3681_v54 }
 0x7f9   : > { %3700 = vmatprep.mubr.msk.f32.mxu1 %vm664_vm1, %v1667_v58 }
 0x8b8   : > { %v3688_v59 = vpop.f32.mrf.mxu1 }
 0x8b9   : > { %v1589_v60 = vsub.f32 %v4472_v24, %v3688_v59 }
 0x8ba   : > { %v1579_v61 = vpop.f32.mrf.mxu1 }
 0x8bb   : > { %v1588_v62 = vsub.f32 %v4474_v42, %v1579_v61  ;;  %3689 = vmatprep.subr.mxu0 %v1589_v60 }
 0x8bc   : > { %3690 = vmatpush3.msra.mxu0 %v1589_v60 }
 0x8bd   : > { %3691 = vmatprep.subr.mxu0 %v1588_v62 }
 0x8be   : > { %3692 = vmatpush3.msra.mxu0 %v1588_v62 }
 0x8bf   : > { %3694 = vmatmul.mubr.msk.f32.vlgmr.msra.gmra.mxu0 %vm664_vm1, %v3681_v54 }
 0x8c0   : > { %3707 = vmatprep.mubr.msk.f32.mxu0 %vm664_vm1, %v4396_v6 }
 0x97f   : > { %v3695_v63 = vpop.f32.mrf.mxu0 }
 0x980   : > { %v1666_v0 = vsub.f32 %v4481_v46, %v3695_v63 }
 0x981   : > { %v1656_v2 = vpop.f32.mrf.mxu0 }
 0x982   : > { %v1665_v3 = vsub.f32 %v4483_v31, %v1656_v2  ;;  %3696 = vmatprep.subr.mxu1 %v1666_v0 }
 0x983   : > { %3697 = vmatpush3.msra.mxu1 %v1666_v0 }
 0x984   : > { %3698 = vmatprep.subr.mxu1 %v1665_v3 }
 0x985   : > { %3699 = vmatpush3.msra.mxu1 %v1665_v3 }
 0x986   : > { %3701 = vmatmul.mubr.msk.f32.vlgmr.msra.gmra.mxu1 %vm664_vm1, %v1668_v4 }
 0xa46   : > { %v3702_v7 = vpop.f32.mrf.mxu1 }
 0xa47   : > { %3703 = vmatprep.subr.mxu0 %v3702_v7  ;;  %v1988_v29 = vmul.f32 0.25, %v3702_v7 }
 0xa48   : > { %v1741_v9 = vpop.f32.mrf.mxu1  ;;  %3704 = vmatpush3.msra.mxu0 %v3702_v7 }
 0xa49   : > { %3705 = vmatprep.subr.mxu0 %v1741_v9  ;;  %v1987_v15 = vmul.f32 0.25, %v1741_v9 }
 0xa4a   : > { %3706 = vmatpush3.msra.mxu0 %v1741_v9 }
 0xa4b   : > { %3708 = vmatmul.mubr.msk.f32.vlgmr.msra.gmra.mxu0 %vm664_vm1, %v4398_v8 }
 0xb0b   : > { %v3709_v10 = vpop.f32.mrf.mxu0 }
 0xb0c   : > { %v1826_v12 = vsub.f32 %v4460_v23, %v3709_v10 }
 0xb0d   : > { %v1816_v13 = vpop.f32.mrf.mxu0 }
 0xb0e   : > { %v1825_v14 = vsub.f32 %v4464_v37, %v1816_v13  ;;  %3710 = vmatprep.subr.mxu1 %v1826_v12  ;;  %3714 = vmatprep.mubr.msk.f32.mxu1 %vm664_vm1, %v1816_v13 }
 0xb0f   : > { %3721 = vmatprep.mubr.msk.f32.mxu0 %vm664_vm1, %v1816_v13  ;;  %3711 = vmatpush3.msra.mxu1 %v1826_v12 }
 0xb10   : > { %3712 = vmatprep.subr.mxu1 %v1825_v14 }
 0xb11   : > { %3713 = vmatpush3.msra.mxu1 %v1825_v14 }
 0xb12   : > { %3715 = vmatmul.mubr.msk.f32.vlgmr.msra.gmra.mxu1 %vm664_vm1, %v3709_v10 }
 0xb13   : > { %3728 = vmatprep.mubr.msk.f32.mxu1 %vm664_vm1, %v1987_v15 }
 0xbd2   : > { %v3716_v17 = vpop.f32.mrf.mxu1 }
 0xbd3   : > { %v1909_v18 = vsub.f32 %v4472_v24, %v3716_v17 }
 0xbd4   : > { %v1899_v19 = vpop.f32.mrf.mxu1 }
 0xbd5   : > { %v1908_v20 = vsub.f32 %v4474_v42, %v1899_v19  ;;  %3717 = vmatprep.subr.mxu0 %v1909_v18 }
 0xbd6   : > { %3718 = vmatpush3.msra.mxu0 %v1909_v18 }
 0xbd7   : > { %3719 = vmatprep.subr.mxu0 %v1908_v20 }
 0xbd8   : > { %3720 = vmatpush3.msra.mxu0 %v1908_v20 }
 0xbd9   : > { %3722 = vmatmul.mubr.msk.f32.vlgmr.msra.gmra.mxu0 %vm664_vm1, %v3709_v10 }
 0xbda   : > { %3735 = vmatprep.mubr.msk.f32.mxu0 %vm664_vm1, %v4396_v6 }
 0xc99   : > { %v3723_v21 = vpop.f32.mrf.mxu0 }
 0xc9a   : > { %v1986_v22 = vsub.f32 %v4481_v46, %v3723_v21 }
 0xc9b   : > { %v1976_v26 = vpop.f32.mrf.mxu0 }
 0xc9c   : > { %v1985_v27 = vsub.f32 %v4483_v31, %v1976_v26  ;;  %3724 = vmatprep.subr.mxu1 %v1986_v22 }
 0xc9d   : > { %3725 = vmatpush3.msra.mxu1 %v1986_v22 }
 0xc9e   : > { %3726 = vmatprep.subr.mxu1 %v1985_v27 }
 0xc9f   : > { %3727 = vmatpush3.msra.mxu1 %v1985_v27 }
 0xca0   : > { %3729 = vmatmul.mubr.msk.f32.vlgmr.msra.gmra.mxu1 %vm664_vm1, %v1988_v29 }
 0xd60   : > { %v3730_v30 = vpop.f32.mrf.mxu1 }
 0xd61   : > { %3731 = vmatprep.subr.mxu0 %v3730_v30  ;;  %v2308_v49 = vmul.f32 0.25, %v3730_v30 }
 0xd62   : > { %v2061_v34 = vpop.f32.mrf.mxu1  ;;  %3732 = vmatpush3.msra.mxu0 %v3730_v30 }
 0xd63   : > { %3733 = vmatprep.subr.mxu0 %v2061_v34  ;;  %v2307_v39 = vmul.f32 0.25, %v2061_v34 }
 0xd64   : > { %3734 = vmatpush3.msra.mxu0 %v2061_v34 }
 0xd65   : > { %3736 = vmatmul.mubr.msk.f32.vlgmr.msra.gmra.mxu0 %vm664_vm1, %v4398_v8 }
 0xe25   : > { %v3737_v35 = vpop.f32.mrf.mxu0 }
 0xe26   : > { %v2146_v36 = vsub.f32 %v4460_v23, %v3737_v35 }
 0xe27   : > { %v2136_v38 = vpop.f32.mrf.mxu0 }
 0xe28   : > { %v2145_v28 = vsub.f32 %v4464_v37, %v2136_v38  ;;  %3738 = vmatprep.subr.mxu1 %v2146_v36  ;;  %3742 = vmatprep.mubr.msk.f32.mxu1 %vm664_vm1, %v2136_v38 }
 0xe29   : > { %3749 = vmatprep.mubr.msk.f32.mxu0 %vm664_vm1, %v2136_v38  ;;  %3739 = vmatpush3.msra.mxu1 %v2146_v36 }
 0xe2a   : > { %3740 = vmatprep.subr.mxu1 %v2145_v28 }
 0xe2b   : > { %3741 = vmatpush3.msra.mxu1 %v2145_v28 }
 0xe2c   : > { %3743 = vmatmul.mubr.msk.f32.vlgmr.msra.gmra.mxu1 %vm664_vm1, %v3737_v35 }
 0xe2d   : > { %3756 = vmatprep.mubr.msk.f32.mxu1 %vm664_vm1, %v2307_v39 }
 0xeec   : > { %v3744_v40 = vpop.f32.mrf.mxu1 }
 0xeed   : > { %v2229_v41 = vsub.f32 %v4472_v24, %v3744_v40 }
 0xeee   : > { %v2219_v43 = vpop.f32.mrf.mxu1 }
 0xeef   : > { %v2228_v33 = vsub.f32 %v4474_v42, %v2219_v43  ;;  %3745 = vmatprep.subr.mxu0 %v2229_v41 }
 0xef0   : > { %3746 = vmatpush3.msra.mxu0 %v2229_v41 }
 0xef1   : > { %3747 = vmatprep.subr.mxu0 %v2228_v33 }
 0xef2   : > { %3748 = vmatpush3.msra.mxu0 %v2228_v33 }
 0xef3   : > { %3750 = vmatmul.mubr.msk.f32.vlgmr.msra.gmra.mxu0 %vm664_vm1, %v3737_v35 }
 0xef4   : > { %3763 = vmatprep.mubr.msk.f32.mxu0 %vm664_vm1, %v4396_v6 }
 0xfb3   : > { %v3751_v44 = vpop.f32.mrf.mxu0 }
 0xfb4   : > { %v2306_v45 = vsub.f32 %v4481_v46, %v3751_v44 }
 0xfb5   : > { %v2296_v47 = vpop.f32.mrf.mxu0 }
 0xfb6   : > { %v2305_v48 = vsub.f32 %v4483_v31, %v2296_v47  ;;  %3752 = vmatprep.subr.mxu1 %v2306_v45 }
 0xfb7   : > { %3753 = vmatpush3.msra.mxu1 %v2306_v45 }
 0xfb8   : > { %3754 = vmatprep.subr.mxu1 %v2305_v48 }
 0xfb9   : > { %3755 = vmatpush3.msra.mxu1 %v2305_v48 }
 0xfba   : > { %3757 = vmatmul.mubr.msk.f32.vlgmr.msra.gmra.mxu1 %vm664_vm1, %v2308_v49 }
0x107a   : > { %v3758_v50 = vpop.f32.mrf.mxu1 }
0x107b   : > { %3759 = vmatprep.subr.mxu0 %v3758_v50  ;;  %v2628_v2 = vmul.f32 0.25, %v3758_v50 }
0x107c   : > { %v2381_v51 = vpop.f32.mrf.mxu1  ;;  %3760 = vmatpush3.msra.mxu0 %v3758_v50 }
0x107d   : > { %3761 = vmatprep.subr.mxu0 %v2381_v51  ;;  %v2627_v56 = vmul.f32 0.25, %v2381_v51 }
0x107e   : > { %3762 = vmatpush3.msra.mxu0 %v2381_v51 }
0x107f   : > { %3764 = vmatmul.mubr.msk.f32.vlgmr.msra.gmra.mxu0 %vm664_vm1, %v4398_v8 }
0x113f   : > { %v3765_v52 = vpop.f32.mrf.mxu0 }
0x1140   : > { %v2466_v53 = vsub.f32 %v4460_v23, %v3765_v52 }
0x1141   : > { %v2456_v54 = vpop.f32.mrf.mxu0 }
0x1142   : > { %v2465_v55 = vsub.f32 %v4464_v37, %v2456_v54  ;;  %3766 = vmatprep.subr.mxu1 %v2466_v53  ;;  %3770 = vmatprep.mubr.msk.f32.mxu1 %vm664_vm1, %v2456_v54 }
0x1143   : > { %3777 = vmatprep.mubr.msk.f32.mxu0 %vm664_vm1, %v2456_v54  ;;  %3767 = vmatpush3.msra.mxu1 %v2466_v53 }
0x1144   : > { %3768 = vmatprep.subr.mxu1 %v2465_v55 }
0x1145   : > { %3769 = vmatpush3.msra.mxu1 %v2465_v55 }
0x1146   : > { %3771 = vmatmul.mubr.msk.f32.vlgmr.msra.gmra.mxu1 %vm664_vm1, %v3765_v52 }
0x1147   : > { %3784 = vmatprep.mubr.msk.f32.mxu1 %vm664_vm1, %v2627_v56 }
0x1206   : > { %v3772_v57 = vpop.f32.mrf.mxu1 }
0x1207   : > { %v2549_v58 = vsub.f32 %v4472_v24, %v3772_v57 }
0x1208   : > { %v2539_v59 = vpop.f32.mrf.mxu1 }
0x1209   : > { %v2548_v60 = vsub.f32 %v4474_v42, %v2539_v59  ;;  %3773 = vmatprep.subr.mxu0 %v2549_v58 }
0x120a   : > { %3774 = vmatpush3.msra.mxu0 %v2549_v58 }
0x120b   : > { %3775 = vmatprep.subr.mxu0 %v2548_v60 }
0x120c   : > { %3776 = vmatpush3.msra.mxu0 %v2548_v60 }
0x120d   : > { %3778 = vmatmul.mubr.msk.f32.vlgmr.msra.gmra.mxu0 %vm664_vm1, %v3765_v52 }
0x120e   : > { %3791 = vmatprep.mubr.msk.f32.mxu0 %vm664_vm1, %v4396_v6 }
0x12cd   : > { %v3779_v61 = vpop.f32.mrf.mxu0 }
0x12ce   : > { %v2626_v62 = vsub.f32 %v4481_v46, %v3779_v61 }
0x12cf   : > { %v2616_v63 = vpop.f32.mrf.mxu0 }
0x12d0   : > { %v2625_v0 = vsub.f32 %v4483_v31, %v2616_v63  ;;  %3780 = vmatprep.subr.mxu1 %v2626_v62 }
0x12d1   : > { %3781 = vmatpush3.msra.mxu1 %v2626_v62 }
0x12d2   : > { %3782 = vmatprep.subr.mxu1 %v2625_v0 }
0x12d3   : > { %3783 = vmatpush3.msra.mxu1 %v2625_v0 }
0x12d4   : > { %3785 = vmatmul.mubr.msk.f32.vlgmr.msra.gmra.mxu1 %vm664_vm1, %v2628_v2 }
0x1394   : > { %v3786_v3 = vpop.f32.mrf.mxu1 }
0x1395   : > { %3787 = vmatprep.subr.mxu0 %v3786_v3  ;;  %v2948_v22 = vmul.f32 0.25, %v3786_v3 }
0x1396   : > { %v2701_v4 = vpop.f32.mrf.mxu1  ;;  %3788 = vmatpush3.msra.mxu0 %v3786_v3 }
0x1397   : > { %3789 = vmatprep.subr.mxu0 %v2701_v4  ;;  %v2947_v12 = vmul.f32 0.25, %v2701_v4 }
0x1398   : > { %3790 = vmatpush3.msra.mxu0 %v2701_v4 }
0x1399   : > { %3792 = vmatmul.mubr.msk.f32.vlgmr.msra.gmra.mxu0 %vm664_vm1, %v4398_v8 }
0x1459   : > { %v3793_v6 = vpop.f32.mrf.mxu0 }
0x145a   : > { %v2786_v7 = vsub.f32 %v4460_v23, %v3793_v6 }
0x145b   : > { %v2776_v9 = vpop.f32.mrf.mxu0 }
0x145c   : > { %v2785_v10 = vsub.f32 %v4464_v37, %v2776_v9  ;;  %3794 = vmatprep.subr.mxu1 %v2786_v7  ;;  %3798 = vmatprep.mubr.msk.f32.mxu1 %vm664_vm1, %v2776_v9  ;;  %v691_v37 = vpop.xlane.xlu1 %690 }
0x145d   : > { %3805 = vmatprep.mubr.msk.f32.mxu0 %vm664_vm1, %v2776_v9  ;;  %3795 = vmatpush3.msra.mxu1 %v2786_v7  ;;  %3921 = vrcp.f32 %v691_v37 }
0x145e   : > { %3796 = vmatprep.subr.mxu1 %v2785_v10 }
0x145f   : > { %3797 = vmatpush3.msra.mxu1 %v2785_v10 }
0x1460   : > { %3799 = vmatmul.mubr.msk.f32.vlgmr.msra.gmra.mxu1 %vm664_vm1, %v3793_v6 }
0x1461   : > { %3812 = vmatprep.mubr.msk.f32.mxu1 %vm664_vm1, %v2947_v12 }
0x1520   : > { %v3800_v8 = vpop.f32.mrf.mxu1 }
0x1521   : > { %v2869_v13 = vsub.f32 %v4472_v24, %v3800_v8  ;;  %v3922_v24 = vpop.eup %3921 }
0x1522   : > { %v2859_v23 = vpop.f32.mrf.mxu1  ;;  %v705_v15 = vmul.f32 %v3922_v24, %v691_v37 }
0x1523   : > { %v2868_v14 = vsub.f32 %v4474_v42, %v2859_v23  ;;  %3801 = vmatprep.subr.mxu0 %v2869_v13 }
0x1524   : > { %3802 = vmatpush3.msra.mxu0 %v2869_v13  ;;  %v709_v17 = vsub.f32 2.0, %v705_v15 }
0x1525   : > { %3803 = vmatprep.subr.mxu0 %v2868_v14 }
0x1526   : > { %3804 = vmatpush3.msra.mxu0 %v2868_v14  ;;  %v713_v19 = vmul.f32 %v3922_v24, %v709_v17 }
0x1527   : > { %3806 = vmatmul.mubr.msk.f32.vlgmr.msra.gmra.mxu0 %vm664_vm1, %v3793_v6  ;;  %3815 = vmatprep.subr.mxu0 %v4458_v32 }
0x1528   : > { %3816 = vmatpush3.msra.mxu0 %v4458_v32  ;;  %v717_v32 = vmul.f32 %v4440_v1, %v713_v19 }
0x1529   : > { %3817 = vmatprep.subr.mxu0 %v4462_v25 }
0x152a   : > { %3818 = vmatpush3.msra.mxu0 %v4462_v25 }
0x15e7   : > { %v3807_v42 = vpop.f32.mrf.mxu0 }
0x15e8   : > { %v2946_v18 = vsub.f32 %v4481_v46, %v3807_v42  ;;  %v694_v46 = vpop.xlane.xlu1 %693 }
0x15e9   : > { %v2936_v20 = vpop.f32.mrf.mxu0  ;;  %3923 = vrcp.f32 %v694_v46 }
0x15ea   : > { %v2945_v21 = vsub.f32 %v4483_v31, %v2936_v20  ;;  %3808 = vmatprep.subr.mxu1 %v2946_v18 }
0x15eb   : > { %3809 = vmatpush3.msra.mxu1 %v2946_v18 }
0x15ec   : > { %3810 = vmatprep.subr.mxu1 %v2945_v21  ;;  %v697_v27 = vpop.xlane.xlu1 %696 }
0x15ed   : > { %3811 = vmatpush3.msra.mxu1 %v2945_v21  ;;  %3925 = vrcp.f32 %v697_v27 }
0x15ee   : > { %3813 = vmatmul.mubr.msk.f32.vlgmr.msra.gmra.mxu1 %vm664_vm1, %v2948_v22 }
0x15ef   : > { %3826 = vmatprep.mubr.msk.f32.mxu1 %vm664_vm1, %v717_v32 }
0x15f0   : > { %v700_v31 = vpop.xlane.xlu1 %699 }
0x15f1   : > { %3927 = vrcp.f32 %v700_v31 }
0x15f6   : > { %v3924_v29 = vpop.eup %3923 }
0x15f7   : > { %v706_v1 = vmul.f32 %v3924_v29, %v694_v46 }
0x15f9   : > { %v710_v36 = vsub.f32 2.0, %v706_v1 }
0x15fa   : > { %v3926_v30 = vpop.eup %3925 }
0x15fb   : > { %v707_v35 = vmul.f32 %v3926_v30, %v697_v27  ;;  %v714_v39 = vmul.f32 %v3924_v29, %v710_v36 }
0x15fd   : > { %v711_v28 = vsub.f32 2.0, %v707_v35  ;;  %v718_v44 = vmul.f32 %v4444_v5, %v714_v39 }
0x15fe   : > { %v3928_v34 = vpop.eup %3927 }
0x15ff   : > { %v708_v38 = vmul.f32 %v3928_v34, %v700_v31  ;;  %v715_v41 = vmul.f32 %v3926_v30, %v711_v28 }
0x1601   : > { %v712_v40 = vsub.f32 2.0, %v708_v38  ;;  %v719_v47 = vmul.f32 %v4448_v11, %v715_v41 }
0x1603   : > { %v716_v45 = vmul.f32 %v3928_v34, %v712_v40 }
0x1605   : > { %v720_v48 = vmul.f32 %v4452_v16, %v716_v45 }
0x16ae   : > { %v3814_v25 = vpop.f32.mrf.mxu1 }
0x16b0   : > { %v3021_v26 = vpop.f32.mrf.mxu1 }
0x16b1   : > { %3819 = vmatprep.mubr.msk.f32.mxu0 %vm664_vm1, %v3021_v26 }
0x16b2   : > { %3820 = vmatmul.mubr.msk.f32.vlgmr.msra.gmra.mxu0 %vm664_vm1, %v3814_v25 }
0x1772   : > { %v3821_v43 = vpop.f32.mrf.mxu0 }
0x1773   : > { %3822 = vmatprep.subr.mxu1 %v3821_v43 }
0x1774   : > { %v3102_v33 = vpop.f32.mrf.mxu0  ;;  %3823 = vmatpush3.msra.mxu1 %v3821_v43 }
0x1775   : > { %3824 = vmatprep.subr.mxu1 %v3102_v33 }
0x1776   : > { %3825 = vmatpush3.msra.mxu1 %v3102_v33 }
0x1777   : > { %3827 = vmatmul.mubr.msk.f32.vlgmr.msra.gmra.mxu1 %vm664_vm1, %v718_v44 }
0x1778   : > { %3829 = vmatprep.mubr.msk.f32.mxu1 %vm664_vm1, %v719_v47 }
0x177b   : > { %3830 = vmatmul.mubr.msk.f32.gmra.mxu1 %vm664_vm1, %v720_v48 }
0x1837   : > { %v3828_v49 = vpop.f32.mrf.mxu1 }
0x1838   : > { %3209 = vst.msk [vmem:[%s373_s5 + $0x8] sm:$0xff] %vm392_vm0, %v3828_v49 }
0x1839   : > { %v3189_v5 = vpop.f32.mrf.mxu1 }
0x183a   : > { %3208 = vst.msk [vmem:[%s373_s5] sm:$0xff] %vm392_vm0, %v3189_v5 }
0x183b   : > { %v3831_v11 = vpop.f32.mrf.mxu1 }
0x183c   : > { %3211 = vst.msk [vmem:[%s373_s5 + $0x18] sm:$0xff] %vm392_vm0, %v3831_v11 }
0x183d   : > { %v3199_v16 = vpop.f32.mrf.mxu1 }
0x183e   : > { %3210 = vst.msk [vmem:[%s373_s5 + $0x10] sm:$0xff] %vm392_vm0, %v3199_v16 }
0x183f   : > { %4026 = shalt.err (!%p4023_p6)
}
0x1840   : > { %s4027_s23 = scalar_lea.hbm %s4589_s21, 512  ;;  %s4031_s29 = scalar_lea.hbm %s4641_s7, 1024 }
0x1841   : > { %p4028_p12 = scmp.ne.s32.totalorder %s4589_s21, %s4027_s23  ;;  %p4032_p4 = scmp.lt.s32.totalorder %s4589_s21, %s4641_s7 }
0x1842   : > { %p4033_p2 = scmp.lt.s32.totalorder %s4031_s29, %s4027_s23 }
0x1843   : > { %p4029_p0 = pnand %p4028_p12, %p4673_p7 }
0x1844   : > { %p4034_p5 = por %p4033_p2, %p4032_p4 }
0x1845   : > { %p4030_p11 = pneg %p4029_p0 }
0x1847   : > { %p4035_p13 = pnand %p4034_p5, %p4030_p11 }
0x1849   : > { %4038 = shalt.err (!%p4035_p13)
}
0x184a   : > { %s4090_s11 = smov 128   ;;  %s4091_s10 = smov 8  }
0x184b   : > { %3838 = dma.vmem_to_hbm [thread:$0]  (%p4673_p7), %s4583_s30, 512, %s4589_s21, %s3213_s28, %s4090_s11, %s4090_s11, %s4091_s10  }
0x184c PF: > { %s4674_s19 = sld [smem:[#allocation13_spill]]  ;;  %s3241_s5 = sand.u32 1, %s4069_s24  }
0x184d   : > { %p4675_p8 = scmp.ne.s32.totalorder %s4661_s13, 0  ;;  %s3242_s8 = scalar_lea.sflag [#allocation4], %s3241_s5 }
0x1852   : > { %p4676_p10 = scmp.ge.s32.totalorder %s4674_s19, 2 }
0x1854   : > { %p3851_p1 = pnand %p4676_p10, %p4675_p8 }
0x1856   : > { %p3852_p3 = pneg %p3851_p1 }
0x1858   : > { %4064 = dma.done.wait (%p3852_p3), %s3242_s8, 512  }
0x1859   : > { %4066 = vsyncadd (%p3852_p3), %s3242_s8, 4294966784  ;;  %s4677_s27 = sld [smem:[#allocation14_spill]]  ;;  %s4680_s24 = smov %s4073_s25 }
0x185a   : > { %s4678_s22 = sld [smem:[#allocation12_spill]] }
0x185b   : > { %s4679_s26 = sld [smem:[#allocation15_spill]] }
0x185f   : > { %p23_p9 = scmp.ge.s32.totalorder %s4677_s27, 4  }
0x1860   : > { %s4681_s25 = smov %s4678_s22 }
0x1861   :  { %25 = sbr.rel (!%p23_p9) target bundleno = 10 (0xa), region = 117 }
0x1866   :  { %3247 = vsyncpa [#allocation3], 1 }
0x1867   :  { %3249 = vsyncpa [#allocation3 + $0x1], 1 }
0x1868   :  { %3250 = vsyncpa [#allocation6], 1 }
0x1869   :  { %3252 = vsyncpa [#allocation6 + $0x1], 1 }
0x186a   :  { %3253 = vsyncpa [#allocation4], 1 }
0x186b   :  { %3255 = vsyncpa [#allocation4 + $0x1], 1 }

</bundles_post_ra>
